<compile_context>
chip_gen: v5e
topology: v5e:2x2
jax: 0.10.0
libtpu: 0.0.40
codegen_flags: <defaults>
</compile_context>

<pallas_src>
import functools

import jax
import jax.numpy as jnp
from jax import lax
from jax.experimental import pallas as pl
from jax.experimental.pallas import tpu as pltpu


def _pick_tile(n, cap):
    """Largest divisor of n <= cap, preferring multiples of 128, then of 8."""
    if n <= cap:
        return n
    best8 = None
    for t in range(cap, 0, -1):
        if n % t:
            continue
        if t % 128 == 0:
            return t
        if best8 is None and t % 8 == 0:
            best8 = t
    # Awkward N (e.g. 197 with a cls token) falls back to a full-N block;
    # padding N to a multiple of 128 upstream is preferable.
    return best8 if best8 is not None else n


def _vmem_limit_bytes():
    """~75% of the chip's physical VMEM (96 MiB v5e/v6e, 48 MiB v7x)."""
    try:
        cap = int(pltpu.get_tpu_info().vmem_capacity_bytes)
    except Exception:
        cap = 64 * 1024 * 1024          # conservative fallback
    return max(32 * 1024 * 1024, (cap * 3) // 4)


def _resident_spec(block_shape, index_map):
    """BlockSpec for a grid-invariant operand: keep it single-buffered."""
    try:
        return pl.BlockSpec(block_shape, index_map,
                            pipeline_mode=pl.Buffered(1))
    except TypeError:                    # older jax without pipeline_mode
        return pl.BlockSpec(block_shape, index_map)


# --------------------------------------------------------------------------
# Kernel 1: fused QKV projection (nn.Linear(dim, 3*dim, bias=False)).
# Weight is pre-transposed once in the wrapper to (C, 3C); pure matmul.
# --------------------------------------------------------------------------
def _qkv_proj_kernel(x_ref, w_ref, q_ref, k_ref, v_ref):
    x = x_ref[0]                                   # (TN, C)   input dtype
    c = x.shape[1]
    qkv = jnp.dot(x, w_ref[...], preferred_element_type=jnp.float32)  # (TN,3C)
    q_ref[0] = qkv[:, :c].astype(q_ref.dtype)
    k_ref[0] = qkv[:, c:2 * c].astype(k_ref.dtype)
    v_ref[0] = qkv[:, 2 * c:].astype(v_ref.dtype)


# --------------------------------------------------------------------------
# Kernel 2: flash attention (online softmax over kv tiles) + output proj.
# Grid (B, q_tiles, heads, kv_tiles); per-head ctx stripes accumulated into a
# (TQ, C) scratch, projected once per q-tile with a resident (C, C) W_proj.
# --------------------------------------------------------------------------
def _flash_attn_proj_kernel(q_ref, k_ref, v_ref, wp_ref, b_ref, o_ref,
                            m_sc, l_sc, acc_sc, ctx_sc, *, scale, head_dim):
    h = pl.program_id(2)
    kv = pl.program_id(3)
    n_h = pl.num_programs(2)
    n_kv = pl.num_programs(3)

    @pl.when(kv == 0)
    def _init_head():
        m_sc[...] = jnp.full(m_sc.shape, -jnp.inf, m_sc.dtype)
        l_sc[...] = jnp.zeros(l_sc.shape, l_sc.dtype)
        acc_sc[...] = jnp.zeros(acc_sc.shape, acc_sc.dtype)

    q = q_ref[0]                                   # (TQ, D) input dtype
    k = k_ref[0]                                   # (TK, D)
    v = v_ref[0]                                   # (TK, D)

    # q @ k^T without materializing a transpose; scale applied in f32.
    s = lax.dot_general(q, k, (((1,), (1,)), ((), ())),
                        preferred_element_type=jnp.float32)      # (TQ, TK)
    s = s * scale

    m_prev = m_sc[...]
    m_new = jnp.maximum(m_prev, jnp.max(s, axis=-1, keepdims=True))
    alpha = jnp.exp(m_prev - m_new)
    p = jnp.exp(s - m_new)
    l_sc[...] = alpha * l_sc[...] + jnp.sum(p, axis=-1, keepdims=True)
    acc_sc[...] = alpha * acc_sc[...] + jnp.dot(
        p.astype(v.dtype), v, preferred_element_type=jnp.float32)
    m_sc[...] = m_new

    @pl.when(kv == n_kv - 1)
    def _finish_head():
        ctx = acc_sc[...] / l_sc[...]              # exact reciprocal
        col = pl.multiple_of(h * head_dim, head_dim)
        ctx_sc[:, pl.ds(col, head_dim)] = ctx.astype(ctx_sc.dtype)

    @pl.when(jnp.logical_and(h == n_h - 1, kv == n_kv - 1))
    def _project():
        out = jnp.dot(ctx_sc[...], wp_ref[...],
                      preferred_element_type=jnp.float32)        # (TQ, C)
        o_ref[0] = (out + b_ref[...].astype(jnp.float32)).astype(o_ref.dtype)


# --------------------------------------------------------------------------
# Wrapper
# --------------------------------------------------------------------------
def attention_pallas(x, wqkv, wproj, bproj, *, num_heads):
    B, N, C = x.shape
    assert C % num_heads == 0
    D = C // num_heads
    scale = D ** (-0.5)
    dtype = x.dtype
    itemsize = jnp.dtype(dtype).itemsize

    # Pre-transpose nn.Linear weights once so kernels feed the MXU directly.
    wqkv_t = wqkv.T.astype(dtype)                  # (C, 3C)
    wproj_t = wproj.T.astype(dtype)                # (C, C)
    bproj2d = bproj.reshape(1, C).astype(dtype)

    vmem_limit = _vmem_limit_bytes()

    # ---- QKV projection --------------------------------------------------
    TN = _pick_tile(N, 512)
    qkv_cost = pl.CostEstimate(
        flops=2 * B * N * C * 3 * C,
        transcendentals=0,
        bytes_accessed=itemsize * (4 * B * N * C + 3 * C * C))

    q, k, v = pl.pallas_call(
        _qkv_proj_kernel,
        out_shape=(jax.ShapeDtypeStruct((B, N, C), dtype),) * 3,
        grid_spec=pltpu.PrefetchScalarGridSpec(
            num_scalar_prefetch=0,
            grid=(B, N // TN),
            in_specs=[
                pl.BlockSpec((1, TN, C), lambda b, i: (b, i, 0)),      # x
                _resident_spec((C, 3 * C), lambda b, i: (0, 0)),       # Wqkv^T
            ],
            out_specs=(
                pl.BlockSpec((1, TN, C), lambda b, i: (b, i, 0)),
                pl.BlockSpec((1, TN, C), lambda b, i: (b, i, 0)),
                pl.BlockSpec((1, TN, C), lambda b, i: (b, i, 0)),
            ),
        ),
        compiler_params=pltpu.CompilerParams(
            dimension_semantics=("parallel", "parallel"),
            vmem_limit_bytes=vmem_limit),
        cost_estimate=qkv_cost,
    )(x, wqkv_t)

    # ---- Flash attention + output projection -----------------------------
    # No reshape/transpose between the kernels: kernel 2 slices heads
    # directly out of the (B, N, C) q/k/v arrays via its BlockSpecs.
    TQ = _pick_tile(N, 512)
    TK = _pick_tile(N, 512)
    # Megacore note (v7x): B * (N // TQ) parallel grid points should be >= 2
    # (and preferably even) so both TensorCores get work; B=2 guarantees it.
    attn_cost = pl.CostEstimate(
        flops=4 * B * num_heads * N * N * D + 2 * B * N * C * C,
        transcendentals=B * num_heads * N * N,
        bytes_accessed=itemsize * (2 * B * N * C
                                   + 2 * B * N * C * max(1, N // TQ)
                                   + C * C + C))

    out = pl.pallas_call(
        functools.partial(_flash_attn_proj_kernel, scale=scale, head_dim=D),
        out_shape=jax.ShapeDtypeStruct((B, N, C), dtype),
        grid_spec=pltpu.PrefetchScalarGridSpec(
            num_scalar_prefetch=0,
            grid=(B, N // TQ, num_heads, N // TK),
            in_specs=[
                pl.BlockSpec((1, TQ, D), lambda b, i, h, j: (b, i, h)),  # q
                pl.BlockSpec((1, TK, D), lambda b, i, h, j: (b, j, h)),  # k
                pl.BlockSpec((1, TK, D), lambda b, i, h, j: (b, j, h)),  # v
                _resident_spec((C, C), lambda b, i, h, j: (0, 0)),       # Wp^T
                _resident_spec((1, C), lambda b, i, h, j: (0, 0)),       # bias
            ],
            out_specs=pl.BlockSpec((1, TQ, C), lambda b, i, h, j: (b, i, 0)),
            scratch_shapes=[
                pltpu.VMEM((TQ, 1), jnp.float32),   # running max
                pltpu.VMEM((TQ, 1), jnp.float32),   # running denominator
                pltpu.VMEM((TQ, D), jnp.float32),   # per-head ctx accumulator
                pltpu.VMEM((TQ, C), dtype),         # concat'd head contexts
            ],
        ),
        compiler_params=pltpu.CompilerParams(
            dimension_semantics=("parallel", "parallel",
                                 "arbitrary", "arbitrary"),
            vmem_limit_bytes=vmem_limit),
        cost_estimate=attn_cost,
    )(q, k, v, wproj_t, bproj2d)

    return out


# --------------------------------------------------------------------------
# Plain-JAX reference (transcription of Attention._naive_attn, default cfg)
# --------------------------------------------------------------------------
def attention_reference(x, wqkv, wproj, bproj, *, num_heads):
    B, N, C = x.shape
    D = C // num_heads
    scale = D ** (-0.5)
    hp = jax.lax.Precision.HIGHEST
    qkv = jnp.einsum('bnc,oc->bno', x, wqkv, precision=hp)       # (B, N, 3C)
    qkv = qkv.reshape(B, N, 3, num_heads, D).transpose(2, 0, 3, 1, 4)
    q, k, v = qkv[0], qkv[1], qkv[2]                             # (B, H, N, D)
    attn = jnp.einsum('bhnd,bhmd->bhnm', q * scale, k, precision=hp)
    attn = jax.nn.softmax(attn, axis=-1)
    out = jnp.einsum('bhnm,bhmd->bhnd', attn, v, precision=hp)
    out = out.transpose(0, 2, 1, 3).reshape(B, N, C)
    return jnp.einsum('bnc,oc->bno', out, wproj, precision=hp) + bproj[None, None, :]


if __name__ == "__main__":
    # Small but layout-friendly shapes: head_dim = 256 // 2 = 128 keeps every
    # block lane-aligned (multiple of 128).
    B, N, dim, num_heads = 2, 128, 256, 2

    key = jax.random.PRNGKey(0)
    k_x, k_qkv, k_proj, k_bias = jax.random.split(key, 4)

    x = jax.random.normal(k_x, (B, N, dim), dtype=jnp.float32)
    # nn.Linear(dim, 3*dim, bias=False): weight shape (3*dim, dim)
    w_qkv = jax.random.normal(k_qkv, (3 * dim, dim), dtype=jnp.float32) * 0.05
    # nn.Linear(dim, dim): weight shape (dim, dim), bias shape (dim,)
    w_proj = jax.random.normal(k_proj, (dim, dim), dtype=jnp.float32) * 0.05
    b_proj = jax.random.normal(k_bias, (dim,), dtype=jnp.float32) * 0.05

    out = attention_pallas(x, w_qkv, w_proj, b_proj, num_heads=num_heads)
    out = jax.block_until_ready(out)

    ref = attention_reference(x, w_qkv, w_proj, b_proj, num_heads=num_heads)
    assert out.shape == (B, N, dim)
    err = float(jnp.max(jnp.abs(out - ref)))
    # Tolerance allows for MXU f32 matmul precision differences vs the
    # HIGHEST-precision reference; structural bugs would be O(1) errors.
    assert jnp.allclose(out, ref, atol=2e-2, rtol=2e-2), f"max abs err {err}"

    print("KERNEL_OK")
</pallas_src>

<mosaic_0001>
module attributes {stable_mosaic.version = 11 : i64} {
  func.func @_qkv_proj_kernel(%arg0: i32, %arg1: i32, %arg2: memref<1x128x256xf32, #tpu.memory_space<vmem>>, %arg3: memref<256x768xf32, #tpu.memory_space<vmem>>, %arg4: memref<1x128x256xf32, #tpu.memory_space<vmem>>, %arg5: memref<1x128x256xf32, #tpu.memory_space<vmem>>, %arg6: memref<1x128x256xf32, #tpu.memory_space<vmem>>) attributes {dimension_semantics = [#tpu.dimension_semantics<parallel>, #tpu.dimension_semantics<parallel>], iteration_bounds = array<i64: 2, 1>, scalar_prefetch = 0 : i64, scratch_operands = 0 : i64, tpu.core_type = #tpu.core_type<tc>, window_params = [{transform_indices = @transform_0, window_bounds = array<i64: 1, 128, 256>}, {pipeline_mode = #tpu.pipeline_mode<synchronous>, transform_indices = @transform_1, window_bounds = array<i64: 256, 768>}, {transform_indices = @transform_2, window_bounds = array<i64: 1, 128, 256>}, {transform_indices = @transform_3, window_bounds = array<i64: 1, 128, 256>}, {transform_indices = @transform_4, window_bounds = array<i64: 1, 128, 256>}]} {
    %c0 = arith.constant 0 : index
    %c0_0 = arith.constant 0 : index
    %c0_1 = arith.constant 0 : index
    %0 = vector.load %arg2[%c0, %c0_0, %c0_1] : memref<1x128x256xf32, #tpu.memory_space<vmem>>, vector<1x128x256xf32>
    %1 = vector.shape_cast %0 : vector<1x128x256xf32> to vector<128x256xf32>
    %c0_2 = arith.constant 0 : index
    %c0_3 = arith.constant 0 : index
    %2 = vector.load %arg3[%c0_2, %c0_3] : memref<256x768xf32, #tpu.memory_space<vmem>>, vector<256x768xf32>
    %cst = arith.constant dense<0.000000e+00> : vector<128x768xf32>
    %3 = tpu.matmul %1, %2, %cst {dimension_numbers = #tpu.dot_dimension_numbers<[1], [0], [0], [1], [0, 0, 1, 1], [], []>} : vector<128x256xf32>, vector<256x768xf32>, vector<128x768xf32> -> vector<128x768xf32>
    %4 = vector.extract_strided_slice %3 {offsets = [0, 0], sizes = [128, 256], strides = [1, 1]} : vector<128x768xf32> to vector<128x256xf32>
    %c0_4 = arith.constant 0 : index
    %c0_5 = arith.constant 0 : index
    %c0_6 = arith.constant 0 : index
    %5 = vector.load %arg4[%c0_4, %c0_5, %c0_6] : memref<1x128x256xf32, #tpu.memory_space<vmem>>, vector<1x128x256xf32>
    %6 = vector.shape_cast %5 : vector<1x128x256xf32> to vector<128x256xf32>
    %7 = vector.shape_cast %4 : vector<128x256xf32> to vector<1x128x256xf32>
    tpu.vector_store %arg4[%c0_4, %c0_5, %c0_6], %7 {strides = array<i32>} : memref<1x128x256xf32, #tpu.memory_space<vmem>>, vector<1x128x256xf32>,
    %8 = vector.extract_strided_slice %3 {offsets = [0, 256], sizes = [128, 256], strides = [1, 1]} : vector<128x768xf32> to vector<128x256xf32>
    %c0_7 = arith.constant 0 : index
    %c0_8 = arith.constant 0 : index
    %c0_9 = arith.constant 0 : index
    %9 = vector.load %arg5[%c0_7, %c0_8, %c0_9] : memref<1x128x256xf32, #tpu.memory_space<vmem>>, vector<1x128x256xf32>
    %10 = vector.shape_cast %9 : vector<1x128x256xf32> to vector<128x256xf32>
    %11 = vector.shape_cast %8 : vector<128x256xf32> to vector<1x128x256xf32>
    tpu.vector_store %arg5[%c0_7, %c0_8, %c0_9], %11 {strides = array<i32>} : memref<1x128x256xf32, #tpu.memory_space<vmem>>, vector<1x128x256xf32>,
    %12 = vector.extract_strided_slice %3 {offsets = [0, 512], sizes = [128, 256], strides = [1, 1]} : vector<128x768xf32> to vector<128x256xf32>
    %c0_10 = arith.constant 0 : index
    %c0_11 = arith.constant 0 : index
    %c0_12 = arith.constant 0 : index
    %13 = vector.load %arg6[%c0_10, %c0_11, %c0_12] : memref<1x128x256xf32, #tpu.memory_space<vmem>>, vector<1x128x256xf32>
    %14 = vector.shape_cast %13 : vector<1x128x256xf32> to vector<128x256xf32>
    %15 = vector.shape_cast %12 : vector<128x256xf32> to vector<1x128x256xf32>
    tpu.vector_store %arg6[%c0_10, %c0_11, %c0_12], %15 {strides = array<i32>} : memref<1x128x256xf32, #tpu.memory_space<vmem>>, vector<1x128x256xf32>,
    return
  }
  func.func @transform_0(%arg0: i32, %arg1: i32) -> (i32, i32, i32) {
    %c0_i32 = arith.constant 0 : i32
    %c0_i32_0 = arith.constant 0 : i32
    return %arg0, %arg1, %c0_i32 : i32, i32, i32
  }
  func.func @transform_1(%arg0: i32, %arg1: i32) -> (i32, i32) {
    %c0_i32 = arith.constant 0 : i32
    %c0_i32_0 = arith.constant 0 : i32
    %c0_i32_1 = arith.constant 0 : i32
    return %c0_i32, %c0_i32_0 : i32, i32
  }
  func.func @transform_2(%arg0: i32, %arg1: i32) -> (i32, i32, i32) {
    %c0_i32 = arith.constant 0 : i32
    %c0_i32_0 = arith.constant 0 : i32
    return %arg0, %arg1, %c0_i32 : i32, i32, i32
  }
  func.func @transform_3(%arg0: i32, %arg1: i32) -> (i32, i32, i32) {
    %c0_i32 = arith.constant 0 : i32
    %c0_i32_0 = arith.constant 0 : i32
    return %arg0, %arg1, %c0_i32 : i32, i32, i32
  }
  func.func @transform_4(%arg0: i32, %arg1: i32) -> (i32, i32, i32) {
    %c0_i32 = arith.constant 0 : i32
    %c0_i32_0 = arith.constant 0 : i32
    return %arg0, %arg1, %c0_i32 : i32, i32, i32
  }
}

</mosaic_0001>

<bundles_post_ra>
// kernel: tpu_custom_call.1
= control target key start
LH: loop header
LB: loop body
LE: loop exit
PB: predicated region body
PF: predicated region fallthrough
CT: control target
= control target key end

     0   :  { %s2579_s0 = inlined_call_operand.hbm [shape: f32[2,128,256], index: 0, kind: input, shape index: {}]   ;;  %s2580_s1 = inlined_call_operand.hbm [shape: f32[256,768], index: 1, kind: input, shape index: {}]   ;;  %s2581_s2 = inlined_call_operand.hbm [shape: f32[2,128,256], index: 2, kind: output, shape index: {0}]   ;;  %s2582_s3 = inlined_call_operand.hbm [shape: f32[2,128,256], index: 3, kind: output, shape index: {1}]   ;;  %s2583_s4 = inlined_call_operand.hbm [shape: f32[2,128,256], index: 4, kind: output, shape index: {2}]  }
   0x1   :  { %2586 = sst [smem:[#allocation16_spill]] %s2580_s1 }
   0x2   :  { %10 = vsyncpa [#allocation3], 0 }
   0x3   :  { %12 = vsyncpa [#allocation3 + $0x1], 0 }
   0x4   :  { %13 = vsyncpa [#allocation6], 0 }
   0x5   :  { %14 = vsyncpa [#allocation4], 0 }
   0x6   :  { %16 = vsyncpa [#allocation4 + $0x1], 0 }
   0x7   :  { %17 = vsyncpa [#allocation9], 0 }
   0x8   :  { %19 = vsyncpa [#allocation9 + $0x1], 0  ;;  %s1990_s15 = smov 0   ;;  %s1992_s16 = smov 0  }
   0x9   :  { %s1994_s17 = smov 0   ;;  %s1996_s18 = smov 0  }
   0xa   :  { %s1998_s19 = smov 0   ;;  %s2000_s20 = smov 0  }
   0xb LB: > { %s2021_s21 = sadd.s32 4294967295, %s1956_s20   ;;  %s2584_s22 = sadd.s32 4294967294, %s1956_s20   ;;  %s1956_s20 = sphi %s2000_s20, %s25_s20   ;;  %s1952_s19 = sphi %s1998_s19, %s2600_s19   ;;  %s1948_s18 = sphi %s1996_s18, %s2599_s18   ;;  %s1944_s17 = sphi %s1994_s17, %s2598_s17   ;;  %s1940_s16 = sphi %s1992_s16, %s2597_s16   ;;  %s1936_s15 = sphi %s1990_s15, %s2596_s15  }
   0xc   : > { %p59_p0 = scmp.ne.s32.totalorder %s1940_s16, %s1936_s15  ;;  %p60_p1 = scmp.eq.s32.totalorder %s2021_s21, 0 }
   0xd   : > { %p106_p2 = scmp.eq.s32.totalorder %s2021_s21, 1  ;;  %p112_p3 = scmp.eq.s32.totalorder %s2584_s22, 1 }
   0xe   : > { %p2032_p4 = por %p60_p1, %p59_p0  ;;  %p1617_p5 = scmp.ge.s32.totalorder %s1956_s20, 1 }
   0xf   : > { %p2037_p6 = por %p112_p3, %p59_p0  ;;  %p175_p7 = scmp.lt.s32.totalorder %s1956_s20, 3 }
  0x10   : > { %s2589_s1 = sld [smem:[#allocation16_spill]]  ;;  %s1958_s29 = smov [#allocation5]  }
  0x11   : > { %p2045_p8 = pnand %p1617_p5, %p175_p7  ;;  %s188_s30 = sshll.u32 %s1958_s29, 4  ;;  %s189_s30 = int_to_ptr.vmem [resolvable:$true] %s188_s30 }
  0x12   : > { %p1619_p11 = scmp.ge.s32.totalorder %s1956_s20, 2  ;;  %s1959_s5 = smov 768  }
  0x13   : > { %p1656_p9 = pneg %p2045_p8  ;;  %s1960_s6 = smov 48  }
  0x14   : > { %s37_s7 = sadd.s32 1, %s1952_s19  ;;  %s46_s8 = sadd.s32 1, %s1944_s17 }
  0x15   : > { %p1657_p10 = pnand %p1656_p9, %p60_p1  ;;  %p39_p12 = scmp.ge.s32.totalorder %s37_s7, 2 }
  0x16   : > { %s186_s27 = sshll.u32 %s2589_s1, 4  ;;  %p53_p13 = scmp.ne.s32.totalorder %s1944_s17, %s1940_s16  ;;  %s187_s27 = int_to_ptr.hbm [resolvable:$true] %s186_s27 }
  0x17   : > { %1659 = dma.hbm_to_vmem [thread:$0]  (!%p1657_p10), %s187_s27, 24576, %s189_s30, [#allocation6], %s1959_s5, %s1959_s5, %s1960_s6  }
  0x18   : > { %p54_p0 = scmp.eq.s32.totalorder %s1956_s20, 0  ;;  %s2602_s7 = smov (%p39_p12, %s37_s7), 0 }
  0x19   : > { %2591 = sst [smem:[#allocation15_spill]] %s2602_s7  ;;  %p2067_p5 = por %p106_p2, %p53_p13 }
  0x1a   : > { %p2061_p3 = por %p54_p0, %p53_p13  ;;  %s41_s11 = ssub.s32 %s1952_s19, %s2602_s7 }
  0x1b   : > { %p1675_p7 = scmp.lt.s32.totalorder %s1956_s20, 2  ;;  %p44_p9 = scmp.eq.s32.totalorder %s41_s11, 0 }
  0x1c   : > { %s202_s12 = sand.u32 1, %s1944_s17   ;;  %s1640_s25 = sshll.u32 %s1952_s19, 8 }
  0x1d   : > { %s1620_s13 = sshll.u32 %s202_s12, 8  ;;  %s214_s29 = scalar_lea.hbm %s2579_s0, %s1640_s25 }
  0x1e   : > { %s2076_s14 = scalar_select %p44_p9, %s1944_s17, %s46_s8  }
  0x1f   : > { %s206_s30 = scalar_lea.vmem [#allocation2], %s1620_s13  ;;  %s215_s6 = sshll.u32 %s214_s29, 4  ;;  %s216_s6 = int_to_ptr.hbm [resolvable:$true] %s215_s6 }
  0x20   : > { %s217_s5 = sshll.u32 %s206_s30, 4  ;;  %p1661_p2 = pnand %p1675_p7, %p2061_p3  ;;  %s218_s5 = int_to_ptr.vmem [resolvable:$true] %s217_s5 }
  0x21   : > { %s203_s22 = scalar_lea.sflag [#allocation3], %s202_s12  ;;  %s1961_s1 = smov 256  }
  0x22   : > { %s1962_s7 = smov 16   ;;  %229 = sbr.rel (%p2045_p8) target bundleno = 593 (0x251), region = 28 }
  0x23   : > { %1663 = dma.hbm_to_vmem [thread:$0]  (!%p1661_p2), %s216_s6, 4096, %s218_s5, %s203_s22, %s1961_s1, %s1961_s1, %s1962_s7  }
  0x24   : > { %s2087_s8 = sand.u32 (!%p2045_p8), 1, %s1940_s16  }
  0x25   : > { %s2090_s11 = sshll.u32 (!%p2045_p8), %s2087_s8, 8  ;;  %s232_s13 = scalar_lea.sflag (!%p2045_p8), [#allocation3], %s2087_s8 }
  0x26   : > { %s2094_s25 = scalar_lea.vmem (!%p2045_p8), [#allocation2], %s2090_s11 }
  0x27   : > { %1919 = dma.done.wait (%p2032_p4), %s232_s13, 4096  }
  0x28   : > { %1921 = vsyncadd (%p2032_p4), %s232_s13, 4294963200 }
  0x29   : > { %1923 = dma.done.wait (%p60_p1), [#allocation6], 24576  }
  0x2a   : > { %1925 = vsyncadd (%p60_p1), [#allocation6], 4294942720  ;;  %v403_v0 = vld [vmem:[#allocation5 + $0x2d8] sm:$0xff]  ;;  %v397_v2 = vld [vmem:[#allocation5 + $0x2a8] sm:$0xff]  ;;  %s2267_s1 = scalar_lea.vmem [#allocation7], %s2090_s11  ;;  %s2366_s22 = scalar_lea.vmem [#allocation8], %s2090_s11 }
  0x2b   : > { %v499_v1 = vld [vmem:[#allocation5 + $0x5d8] sm:$0xff]  ;;  %634 = vmatpush.msra.mxu2 %v403_v0  ;;  %v493_v3 = vld [vmem:[#allocation5 + $0x5a8] sm:$0xff]  ;;  %v402_v6 = vld [vmem:[#allocation5 + $0x2d0] sm:$0xff]  ;;  %s2450_s23 = sshll.u32 %s1948_s18, 8  ;;  %s1385_s12 = sand.u32 1, %s2021_s21  }
  0x2c   : > { %699 = vmatpush.msra.mxu3 %v499_v1  ;;  %v391_v4 = vld [vmem:[#allocation5 + $0x278] sm:$0xff]  ;;  %v498_v7 = vld [vmem:[#allocation5 + $0x5d0] sm:$0xff]  ;;  %v396_v8 = vld [vmem:[#allocation5 + $0x2a0] sm:$0xff]  ;;  %504 = vmatpush.msra.mxu0 %v402_v6  ;;  %s1425_s9 = scalar_lea.hbm %s2582_s3, %s2450_s23  ;;  %s1426_s26 = sshll.u32 %s2366_s22, 4  ;;  %s1427_s26 = int_to_ptr.vmem [resolvable:$true] %s1426_s26 }
  0x2d   : > { %v487_v5 = vld [vmem:[#allocation5 + $0x578] sm:$0xff]  ;;  %635 = vmatpush.msra.mxu2 %v397_v2  ;;  %v492_v9 = vld [vmem:[#allocation5 + $0x5a0] sm:$0xff]  ;;  %569 = vmatpush.msra.mxu1 %v498_v7  ;;  %v385_v10 = vld [vmem:[#allocation5 + $0x248] sm:$0xff]  ;;  %s1428_s18 = sshll.u32 %s1425_s9, 4  ;;  %s2462_s27 = scalar_lea.sflag [#allocation9], %s1385_s12  ;;  %s1429_s18 = int_to_ptr.hbm [resolvable:$true] %s1428_s18 }
  0x2e   : > { %700 = vmatpush.msra.mxu3 %v493_v3  ;;  %v481_v11 = vld [vmem:[#allocation5 + $0x548] sm:$0xff]  ;;  %v390_v12 = vld [vmem:[#allocation5 + $0x270] sm:$0xff]  ;;  %505 = vmatpush.msra.mxu0 %v396_v8  ;;  %v379_v14 = vld [vmem:[#allocation5 + $0x218] sm:$0xff]  ;;  %s1824_s29 = sshra.s32 %s1429_s18, 4  ;;  %s1830_s6 = scalar_lea.hbm %s2582_s3, 512  ;;  %s1825_s29 = int_to_ptr.hbm [resolvable:$true] %s1824_s29 }
  0x2f   : > { %636 = vmatpush.msra.mxu2 %v391_v4  ;;  %v486_v13 = vld [vmem:[#allocation5 + $0x570] sm:$0xff]  ;;  %570 = vmatpush.msra.mxu1 %v492_v9  ;;  %v475_v15 = vld [vmem:[#allocation5 + $0x518] sm:$0xff]  ;;  %v384_v16 = vld [vmem:[#allocation5 + $0x240] sm:$0xff]  ;;  %s1826_s30 = scalar_lea.hbm %s1825_s29, 256  ;;  %p1831_p10 = scmp.lt.s32.totalorder %s1825_s29, %s2582_s3 }
  0x30   : > { %701 = vmatpush.msra.mxu3 %v487_v5  ;;  %v480_v17 = vld [vmem:[#allocation5 + $0x540] sm:$0xff]  ;;  %506 = vmatpush.msra.mxu0 %v390_v12  ;;  %v373_v18 = vld [vmem:[#allocation5 + $0x1e8] sm:$0xff]  ;;  %v378_v20 = vld [vmem:[#allocation5 + $0x210] sm:$0xff]  ;;  %p1827_p1 = scmp.ne.s32.totalorder %s1825_s29, %s1826_s30  ;;  %p1832_p12 = scmp.lt.s32.totalorder %s1830_s6, %s1826_s30 }
  0x31   : > { %637 = vmatpush.msra.mxu2 %v385_v10  ;;  %571 = vmatpush.msra.mxu1 %v486_v13  ;;  %v469_v19 = vld [vmem:[#allocation5 + $0x4e8] sm:$0xff]  ;;  %v474_v21 = vld [vmem:[#allocation5 + $0x510] sm:$0xff]  ;;  %v367_v22 = vld [vmem:[#allocation5 + $0x1b8] sm:$0xff] }
  0x32   : > { %702 = vmatpush.msra.mxu3 %v481_v11  ;;  %507 = vmatpush.msra.mxu0 %v384_v16  ;;  %v463_v23 = vld [vmem:[#allocation5 + $0x4b8] sm:$0xff]  ;;  %v372_v24 = vld [vmem:[#allocation5 + $0x1e0] sm:$0xff]  ;;  %v361_v26 = vld [vmem:[#allocation5 + $0x188] sm:$0xff]  ;;  %p1828_p4 = pnand %p1827_p1, %p2067_p5  ;;  %p1833_p13 = por %p1832_p12, %p1831_p10 }
  0x33   : > { %638 = vmatpush.msra.mxu2 %v379_v14  ;;  %572 = vmatpush.msra.mxu1 %v480_v17  ;;  %v468_v25 = vld [vmem:[#allocation5 + $0x4e0] sm:$0xff]  ;;  %v457_v27 = vld [vmem:[#allocation5 + $0x488] sm:$0xff]  ;;  %v366_v28 = vld [vmem:[#allocation5 + $0x1b0] sm:$0xff] }
  0x34   : > { %703 = vmatpush.msra.mxu3 %v475_v15  ;;  %508 = vmatpush.msra.mxu0 %v378_v20  ;;  %v462_v29 = vld [vmem:[#allocation5 + $0x4b0] sm:$0xff]  ;;  %v355_v30 = vld [vmem:[#allocation5 + $0x158] sm:$0xff]  ;;  %v360_v32 = vld [vmem:[#allocation5 + $0x180] sm:$0xff]  ;;  %p1829_p8 = pneg %p1828_p4 }
  0x35   : > { %639 = vmatpush.msra.mxu2 %v373_v18  ;;  %573 = vmatpush.msra.mxu1 %v474_v21  ;;  %v451_v31 = vld [vmem:[#allocation5 + $0x458] sm:$0xff]  ;;  %v456_v33 = vld [vmem:[#allocation5 + $0x480] sm:$0xff]  ;;  %v349_v34 = vld [vmem:[#allocation5 + $0x128] sm:$0xff] }
  0x36   : > { %704 = vmatpush.msra.mxu3 %v469_v19  ;;  %509 = vmatpush.msra.mxu0 %v372_v24  ;;  %v445_v35 = vld [vmem:[#allocation5 + $0x428] sm:$0xff]  ;;  %v354_v36 = vld [vmem:[#allocation5 + $0x150] sm:$0xff]  ;;  %v343_v38 = vld [vmem:[#allocation5 + $0xf8] sm:$0xff]  ;;  %p1834_p0 = pnand %p1833_p13, %p1829_p8 }
  0x37   : > { %640 = vmatpush.msra.mxu2 %v367_v22  ;;  %574 = vmatpush.msra.mxu1 %v468_v25  ;;  %v450_v37 = vld [vmem:[#allocation5 + $0x450] sm:$0xff]  ;;  %v439_v39 = vld [vmem:[#allocation5 + $0x3f8] sm:$0xff]  ;;  %v348_v40 = vld [vmem:[#allocation5 + $0x120] sm:$0xff] }
  0x38   : > { %705 = vmatpush.msra.mxu3 %v463_v23  ;;  %510 = vmatpush.msra.mxu0 %v366_v28  ;;  %v444_v41 = vld [vmem:[#allocation5 + $0x420] sm:$0xff]  ;;  %v337_v42 = vld [vmem:[#allocation5 + $0xc8] sm:$0xff]  ;;  %v342_v44 = vld [vmem:[#allocation5 + $0xf0] sm:$0xff] }
  0x39   : > { %641 = vmatpush.msra.mxu2 %v361_v26  ;;  %575 = vmatpush.msra.mxu1 %v462_v29  ;;  %v433_v43 = vld [vmem:[#allocation5 + $0x3c8] sm:$0xff]  ;;  %v438_v45 = vld [vmem:[#allocation5 + $0x3f0] sm:$0xff]  ;;  %v331_v46 = vld [vmem:[#allocation5 + $0x98] sm:$0xff] }
  0x3a   : > { %706 = vmatpush.msra.mxu3 %v457_v27  ;;  %511 = vmatpush.msra.mxu0 %v360_v32  ;;  %v427_v47 = vld [vmem:[#allocation5 + $0x398] sm:$0xff]  ;;  %v336_v48 = vld [vmem:[#allocation5 + $0xc0] sm:$0xff]  ;;  %v325_v50 = vld [vmem:[#allocation5 + $0x68] sm:$0xff] }
  0x3b   : > { %642 = vmatpush.msra.mxu2 %v355_v30  ;;  %576 = vmatpush.msra.mxu1 %v456_v33  ;;  %v432_v49 = vld [vmem:[#allocation5 + $0x3c0] sm:$0xff]  ;;  %v421_v51 = vld [vmem:[#allocation5 + $0x368] sm:$0xff]  ;;  %v330_v52 = vld [vmem:[#allocation5 + $0x90] sm:$0xff] }
  0x3c   : > { %707 = vmatpush.msra.mxu3 %v451_v31  ;;  %512 = vmatpush.msra.mxu0 %v354_v36  ;;  %v426_v53 = vld [vmem:[#allocation5 + $0x390] sm:$0xff]  ;;  %v319_v54 = vld [vmem:[#allocation5 + $0x38] sm:$0xff]  ;;  %v324_v56 = vld [vmem:[#allocation5 + $0x60] sm:$0xff] }
  0x3d   : > { %643 = vmatpush.msra.mxu2 %v349_v34  ;;  %577 = vmatpush.msra.mxu1 %v450_v37  ;;  %v415_v55 = vld [vmem:[#allocation5 + $0x338] sm:$0xff]  ;;  %v420_v57 = vld [vmem:[#allocation5 + $0x360] sm:$0xff]  ;;  %v313_v58 = vld [vmem:[#allocation5 + $0x8] sm:$0xff] }
  0x3e   : > { %708 = vmatpush.msra.mxu3 %v445_v35  ;;  %513 = vmatpush.msra.mxu0 %v348_v40  ;;  %v409_v59 = vld [vmem:[#allocation5 + $0x308] sm:$0xff]  ;;  %v2105_v60 = vld [vmem:[%s2094_s25] sm:$0xff]  ;;  %v318_v0 = vld [vmem:[#allocation5 + $0x30] sm:$0xff] }
  0x3f   : > { %644 = vmatpush.msra.mxu2 %v343_v38  ;;  %578 = vmatpush.msra.mxu1 %v444_v41  ;;  %v2108_v61 = vld [vmem:[%s2094_s25 + $0x8] sm:$0xff]  ;;  %v414_v1 = vld [vmem:[#allocation5 + $0x330] sm:$0xff]  ;;  %v399_v2 = vld [vmem:[#allocation5 + $0x2b8] sm:$0xff] }
  0x40   : > { %709 = vmatpush.msra.mxu3 %v439_v39  ;;  %514 = vmatpush.msra.mxu0 %v342_v44  ;;  %v405_v62 = vld [vmem:[#allocation5 + $0x2e8] sm:$0xff]  ;;  %v495_v3 = vld [vmem:[#allocation5 + $0x5b8] sm:$0xff]  ;;  %v312_v4 = vld [vmem:[#allocation5] sm:$0xff] }
  0x41   : > { %645 = vmatpush.msra.mxu2 %v337_v42  ;;  %579 = vmatpush.msra.mxu1 %v438_v45  ;;  %v501_v63 = vld [vmem:[#allocation5 + $0x5e8] sm:$0xff]  ;;  %v408_v5 = vld [vmem:[#allocation5 + $0x300] sm:$0xff]  ;;  %v2115_v10 = vld [vmem:[%s2094_s25 + $0x10] sm:$0xff] }
  0x42   : > { %710 = vmatpush.msra.mxu3 %v433_v43  ;;  %515 = vmatpush.msra.mxu0 %v336_v48  ;;  %v404_v6 = vld [vmem:[#allocation5 + $0x2e0] sm:$0xff]  ;;  %v393_v8 = vld [vmem:[#allocation5 + $0x288] sm:$0xff]  ;;  %v2118_v11 = vld [vmem:[%s2094_s25 + $0x18] sm:$0xff] }
  0x43   : > { %646 = vmatpush.msra.mxu2 %v331_v46  ;;  %580 = vmatpush.msra.mxu1 %v432_v49  ;;  %v500_v7 = vld [vmem:[#allocation5 + $0x5e0] sm:$0xff]  ;;  %v489_v9 = vld [vmem:[#allocation5 + $0x588] sm:$0xff]  ;;  %v398_v12 = vld [vmem:[#allocation5 + $0x2b0] sm:$0xff] }
  0x44   : > { %711 = vmatpush.msra.mxu3 %v427_v47  ;;  %516 = vmatpush.msra.mxu0 %v330_v52  ;;  %v494_v13 = vld [vmem:[#allocation5 + $0x5b0] sm:$0xff]  ;;  %v387_v14 = vld [vmem:[#allocation5 + $0x258] sm:$0xff]  ;;  %v392_v16 = vld [vmem:[#allocation5 + $0x280] sm:$0xff] }
  0x45   : > { %647 = vmatpush.msra.mxu2 %v325_v50  ;;  %581 = vmatpush.msra.mxu1 %v426_v53  ;;  %v483_v15 = vld [vmem:[#allocation5 + $0x558] sm:$0xff]  ;;  %v488_v17 = vld [vmem:[#allocation5 + $0x580] sm:$0xff]  ;;  %v381_v18 = vld [vmem:[#allocation5 + $0x228] sm:$0xff] }
  0x46   : > { %712 = vmatpush.msra.mxu3 %v421_v51  ;;  %517 = vmatpush.msra.mxu0 %v324_v56  ;;  %v477_v19 = vld [vmem:[#allocation5 + $0x528] sm:$0xff]  ;;  %v386_v20 = vld [vmem:[#allocation5 + $0x250] sm:$0xff]  ;;  %v375_v22 = vld [vmem:[#allocation5 + $0x1f8] sm:$0xff] }
  0x47   : > { %648 = vmatpush.msra.mxu2 %v319_v54  ;;  %582 = vmatpush.msra.mxu1 %v420_v57  ;;  %v482_v21 = vld [vmem:[#allocation5 + $0x550] sm:$0xff]  ;;  %v471_v23 = vld [vmem:[#allocation5 + $0x4f8] sm:$0xff]  ;;  %v2125_v24 = vld [vmem:[%s2094_s25 + $0x20] sm:$0xff] }
  0x48   : > { %713 = vmatpush.msra.mxu3 %v415_v55  ;;  %518 = vmatpush.msra.mxu0 %v318_v0  ;;  %v2128_v25 = vld [vmem:[%s2094_s25 + $0x28] sm:$0xff]  ;;  %v380_v26 = vld [vmem:[#allocation5 + $0x220] sm:$0xff]  ;;  %v374_v28 = vld [vmem:[#allocation5 + $0x1f0] sm:$0xff] }
  0x49   : > { %649 = vmatpush.msra.mxu2 %v313_v58  ;;  %583 = vmatpush.msra.mxu1 %v414_v1  ;;  %v476_v27 = vld [vmem:[#allocation5 + $0x520] sm:$0xff]  ;;  %v470_v29 = vld [vmem:[#allocation5 + $0x4f0] sm:$0xff]  ;;  %v369_v30 = vld [vmem:[#allocation5 + $0x1c8] sm:$0xff] }
  0x4a   : > { %714 = vmatpush.msra.mxu3 %v409_v59  ;;  %650 = vmatmul.f32.vlgmr.msra.gmra.mxu2 %v2105_v60  ;;  %v465_v31 = vld [vmem:[#allocation5 + $0x4c8] sm:$0xff]  ;;  %v2133_v32 = vld [vmem:[%s2094_s25 + $0x30] sm:$0xff]  ;;  %v2138_v33 = vld [vmem:[%s2094_s25 + $0x38] sm:$0xff] }
  0x4b   : > { %715 = vmatmul.f32.vlgmr.msra.gmra.mxu3 %v2108_v61  ;;  %894 = vmatpush.msrb.mxu2 %v405_v62  ;;  %v368_v34 = vld [vmem:[#allocation5 + $0x1c0] sm:$0xff]  ;;  %v363_v36 = vld [vmem:[#allocation5 + $0x198] sm:$0xff]  ;;  %v2148_v39 = vld [vmem:[%s2094_s25 + $0x48] sm:$0xff] }
  0x4c   : > { %959 = vmatpush.msrb.mxu3 %v501_v63  ;;  %519 = vmatpush.msra.mxu0 %v312_v4  ;;  %v464_v35 = vld [vmem:[#allocation5 + $0x4c0] sm:$0xff]  ;;  %v459_v37 = vld [vmem:[#allocation5 + $0x498] sm:$0xff]  ;;  %v362_v40 = vld [vmem:[#allocation5 + $0x190] sm:$0xff] }
  0x4d   : > { %895 = vmatpush.msrb.mxu2 %v399_v2  ;;  %584 = vmatpush.msra.mxu1 %v408_v5  ;;  %v2143_v38 = vld [vmem:[%s2094_s25 + $0x40] sm:$0xff]  ;;  %v458_v41 = vld [vmem:[#allocation5 + $0x490] sm:$0xff]  ;;  %v357_v42 = vld [vmem:[#allocation5 + $0x168] sm:$0xff] }
  0x4e   : > { %960 = vmatpush.msrb.mxu3 %v495_v3  ;;  %520 = vmatmul.f32.vlgmr.msra.gmra.mxu0 %v2105_v60  ;;  %v453_v43 = vld [vmem:[#allocation5 + $0x468] sm:$0xff]  ;;  %v2153_v44 = vld [vmem:[%s2094_s25 + $0x50] sm:$0xff]  ;;  %v2158_v45 = vld [vmem:[%s2094_s25 + $0x58] sm:$0xff] }
  0x4f   : > { %585 = vmatmul.f32.vlgmr.msra.gmra.mxu1 %v2108_v61  ;;  %764 = vmatpush.msrb.mxu0 %v404_v6  ;;  %v356_v46 = vld [vmem:[#allocation5 + $0x160] sm:$0xff]  ;;  %v351_v48 = vld [vmem:[#allocation5 + $0x138] sm:$0xff]  ;;  %v2168_v51 = vld [vmem:[%s2094_s25 + $0x68] sm:$0xff] }
  0x50   : > { %829 = vmatpush.msrb.mxu1 %v500_v7  ;;  %896 = vmatpush.msrb.mxu2 %v393_v8  ;;  %v452_v47 = vld [vmem:[#allocation5 + $0x460] sm:$0xff]  ;;  %v447_v49 = vld [vmem:[#allocation5 + $0x438] sm:$0xff]  ;;  %v350_v52 = vld [vmem:[#allocation5 + $0x130] sm:$0xff] }
  0x51   : > { %961 = vmatpush.msrb.mxu3 %v489_v9  ;;  %765 = vmatpush.msrb.mxu0 %v398_v12  ;;  %v2163_v50 = vld [vmem:[%s2094_s25 + $0x60] sm:$0xff]  ;;  %v446_v53 = vld [vmem:[#allocation5 + $0x430] sm:$0xff]  ;;  %v345_v54 = vld [vmem:[#allocation5 + $0x108] sm:$0xff] }
  0x52   : > { %653 = vmatmul.f32.gmra.mxu2 %v2115_v10  ;;  %830 = vmatpush.msrb.mxu1 %v494_v13  ;;  %v441_v55 = vld [vmem:[#allocation5 + $0x408] sm:$0xff]  ;;  %v2173_v56 = vld [vmem:[%s2094_s25 + $0x70] sm:$0xff]  ;;  %v2178_v57 = vld [vmem:[%s2094_s25 + $0x78] sm:$0xff] }
  0x53   : > { %718 = vmatmul.f32.gmra.mxu3 %v2118_v11  ;;  %897 = vmatpush.msrb.mxu2 %v387_v14  ;;  %v344_v58 = vld [vmem:[#allocation5 + $0x100] sm:$0xff]  ;;  %v339_v62 = vld [vmem:[#allocation5 + $0xd8] sm:$0xff]  ;;  %v2188_v1 = vld [vmem:[%s2094_s25 + $0x88] sm:$0xff] }
  0x54   : > { %962 = vmatpush.msrb.mxu3 %v483_v15  ;;  %766 = vmatpush.msrb.mxu0 %v392_v16  ;;  %v440_v59 = vld [vmem:[#allocation5 + $0x400] sm:$0xff]  ;;  %v435_v63 = vld [vmem:[#allocation5 + $0x3d8] sm:$0xff]  ;;  %v338_v2 = vld [vmem:[#allocation5 + $0xd0] sm:$0xff] }
  0x55   : > { %831 = vmatpush.msrb.mxu1 %v488_v17  ;;  %898 = vmatpush.msrb.mxu2 %v381_v18  ;;  %v2183_v0 = vld [vmem:[%s2094_s25 + $0x80] sm:$0xff]  ;;  %v434_v3 = vld [vmem:[#allocation5 + $0x3d0] sm:$0xff]  ;;  %v333_v4 = vld [vmem:[#allocation5 + $0xa8] sm:$0xff] }
  0x56   : > { %963 = vmatpush.msrb.mxu3 %v477_v19  ;;  %523 = vmatmul.f32.gmra.mxu0 %v2115_v10  ;;  %v429_v5 = vld [vmem:[#allocation5 + $0x3a8] sm:$0xff]  ;;  %v2193_v6 = vld [vmem:[%s2094_s25 + $0x90] sm:$0xff]  ;;  %v2198_v7 = vld [vmem:[%s2094_s25 + $0x98] sm:$0xff] }
  0x57   : > { %588 = vmatmul.f32.gmra.mxu1 %v2118_v11  ;;  %767 = vmatpush.msrb.mxu0 %v386_v20  ;;  %v332_v8 = vld [vmem:[#allocation5 + $0xa0] sm:$0xff]  ;;  %v327_v12 = vld [vmem:[#allocation5 + $0x78] sm:$0xff]  ;;  %v2208_v15 = vld [vmem:[%s2094_s25 + $0xa8] sm:$0xff] }
  0x58   : > { %832 = vmatpush.msrb.mxu1 %v482_v21  ;;  %899 = vmatpush.msrb.mxu2 %v375_v22  ;;  %v428_v9 = vld [vmem:[#allocation5 + $0x3a0] sm:$0xff]  ;;  %v423_v13 = vld [vmem:[#allocation5 + $0x378] sm:$0xff]  ;;  %v326_v16 = vld [vmem:[#allocation5 + $0x70] sm:$0xff] }
  0x59   : > { %964 = vmatpush.msrb.mxu3 %v471_v23  ;;  %768 = vmatpush.msrb.mxu0 %v380_v26  ;;  %v2203_v14 = vld [vmem:[%s2094_s25 + $0xa0] sm:$0xff]  ;;  %v422_v17 = vld [vmem:[#allocation5 + $0x370] sm:$0xff]  ;;  %v321_v18 = vld [vmem:[#allocation5 + $0x48] sm:$0xff] }
  0x5a   : > { %656 = vmatmul.f32.gmra.mxu2 %v2125_v24  ;;  %833 = vmatpush.msrb.mxu1 %v476_v27  ;;  %v417_v19 = vld [vmem:[#allocation5 + $0x348] sm:$0xff]  ;;  %v2213_v20 = vld [vmem:[%s2094_s25 + $0xb0] sm:$0xff]  ;;  %v2218_v21 = vld [vmem:[%s2094_s25 + $0xb8] sm:$0xff] }
  0x5b   : > { %721 = vmatmul.f32.gmra.mxu3 %v2128_v25  ;;  %900 = vmatpush.msrb.mxu2 %v369_v30  ;;  %v320_v22 = vld [vmem:[#allocation5 + $0x40] sm:$0xff]  ;;  %v315_v26 = vld [vmem:[#allocation5 + $0x18] sm:$0xff]  ;;  %v314_v30 = vld [vmem:[#allocation5 + $0x10] sm:$0xff] }
  0x5c   : > { %965 = vmatpush.msrb.mxu3 %v465_v31  ;;  %769 = vmatpush.msrb.mxu0 %v374_v28  ;;  %v416_v23 = vld [vmem:[#allocation5 + $0x340] sm:$0xff]  ;;  %v411_v27 = vld [vmem:[#allocation5 + $0x318] sm:$0xff]  ;;  %v410_v31 = vld [vmem:[#allocation5 + $0x310] sm:$0xff] }
  0x5d   : > { %834 = vmatpush.msrb.mxu1 %v470_v29  ;;  %901 = vmatpush.msrb.mxu2 %v363_v36  ;;  %v2223_v28 = vld [vmem:[%s2094_s25 + $0xc0] sm:$0xff]  ;;  %v2228_v29 = vld [vmem:[%s2094_s25 + $0xc8] sm:$0xff]  ;;  %v2235_v36 = vld [vmem:[%s2094_s25 + $0xd0] sm:$0xff] }
  0x5e   : > { %526 = vmatmul.f32.gmra.mxu0 %v2125_v24  ;;  %966 = vmatpush.msrb.mxu3 %v459_v37  ;;  %v2238_v37 = vld [vmem:[%s2094_s25 + $0xd8] sm:$0xff] }
  0x5f   : > { %591 = vmatmul.f32.gmra.mxu1 %v2128_v25  ;;  %770 = vmatpush.msrb.mxu0 %v368_v34  ;;  %v407_v34 = vld [vmem:[#allocation5 + $0x2f8] sm:$0xff] }
  0x60   : > { %835 = vmatpush.msrb.mxu1 %v464_v35  ;;  %902 = vmatpush.msrb.mxu2 %v357_v42  ;;  %v503_v35 = vld [vmem:[#allocation5 + $0x5f8] sm:$0xff]  ;;  %v401_v42 = vld [vmem:[#allocation5 + $0x2c8] sm:$0xff] }
  0x61   : > { %771 = vmatpush.msrb.mxu0 %v362_v40  ;;  %967 = vmatpush.msrb.mxu3 %v453_v43  ;;  %v406_v40 = vld [vmem:[#allocation5 + $0x2f0] sm:$0xff]  ;;  %v497_v43 = vld [vmem:[#allocation5 + $0x5c8] sm:$0xff] }
  0x62   : > { %659 = vmatmul.f32.gmra.mxu2 %v2133_v32  ;;  %836 = vmatpush.msrb.mxu1 %v458_v41  ;;  %v502_v41 = vld [vmem:[#allocation5 + $0x5f0] sm:$0xff] }
  0x63   : > { %724 = vmatmul.f32.gmra.mxu3 %v2138_v33  ;;  %772 = vmatpush.msrb.mxu0 %v356_v46  ;;  %v2245_v46 = vld [vmem:[%s2094_s25 + $0xe0] sm:$0xff] }
  0x64   : > { %837 = vmatpush.msrb.mxu1 %v452_v47  ;;  %903 = vmatpush.msrb.mxu2 %v351_v48  ;;  %v2248_v47 = vld [vmem:[%s2094_s25 + $0xe8] sm:$0xff]  ;;  %v400_v48 = vld [vmem:[#allocation5 + $0x2c0] sm:$0xff] }
  0x65   : > { %968 = vmatpush.msrb.mxu3 %v447_v49  ;;  %773 = vmatpush.msrb.mxu0 %v350_v52  ;;  %v496_v49 = vld [vmem:[#allocation5 + $0x5c0] sm:$0xff]  ;;  %v395_v52 = vld [vmem:[#allocation5 + $0x298] sm:$0xff] }
  0x66   : > { %529 = vmatmul.f32.gmra.mxu0 %v2133_v32  ;;  %838 = vmatpush.msrb.mxu1 %v446_v53  ;;  %v491_v53 = vld [vmem:[#allocation5 + $0x598] sm:$0xff] }
  0x67   : > { %594 = vmatmul.f32.gmra.mxu1 %v2138_v33  ;;  %904 = vmatpush.msrb.mxu2 %v345_v54  ;;  %v2255_v54 = vld [vmem:[%s2094_s25 + $0xf0] sm:$0xff] }
  0x68   : > { %969 = vmatpush.msrb.mxu3 %v441_v55  ;;  %774 = vmatpush.msrb.mxu0 %v344_v58  ;;  %v2258_v55 = vld [vmem:[%s2094_s25 + $0xf8] sm:$0xff]  ;;  %v394_v58 = vld [vmem:[#allocation5 + $0x290] sm:$0xff] }
  0x69   : > { %839 = vmatpush.msrb.mxu1 %v440_v59  ;;  %905 = vmatpush.msrb.mxu2 %v339_v62  ;;  %v490_v59 = vld [vmem:[#allocation5 + $0x590] sm:$0xff]  ;;  %v389_v62 = vld [vmem:[#allocation5 + $0x268] sm:$0xff] }
  0x6a   : > { %662 = vmatmul.f32.gmra.mxu2 %v2143_v38  ;;  %970 = vmatpush.msrb.mxu3 %v435_v63  ;;  %v485_v63 = vld [vmem:[#allocation5 + $0x568] sm:$0xff] }
  0x6b   : > { %727 = vmatmul.f32.gmra.mxu3 %v2148_v39  ;;  %775 = vmatpush.msrb.mxu0 %v338_v2  ;;  %v388_v2 = vld [vmem:[#allocation5 + $0x260] sm:$0xff] }
  0x6c   : > { %840 = vmatpush.msrb.mxu1 %v434_v3  ;;  %906 = vmatpush.msrb.mxu2 %v333_v4  ;;  %v484_v3 = vld [vmem:[#allocation5 + $0x560] sm:$0xff]  ;;  %v383_v4 = vld [vmem:[#allocation5 + $0x238] sm:$0xff] }
  0x6d   : > { %971 = vmatpush.msrb.mxu3 %v429_v5  ;;  %776 = vmatpush.msrb.mxu0 %v332_v8  ;;  %v479_v5 = vld [vmem:[#allocation5 + $0x538] sm:$0xff] }
  0x6e   : > { %532 = vmatmul.f32.gmra.mxu0 %v2143_v38  ;;  %841 = vmatpush.msrb.mxu1 %v428_v9 }
  0x6f   : > { %597 = vmatmul.f32.gmra.mxu1 %v2148_v39  ;;  %907 = vmatpush.msrb.mxu2 %v327_v12 }
  0x70   : > { %972 = vmatpush.msrb.mxu3 %v423_v13  ;;  %777 = vmatpush.msrb.mxu0 %v326_v16 }
  0x71   : > { %842 = vmatpush.msrb.mxu1 %v422_v17  ;;  %908 = vmatpush.msrb.mxu2 %v321_v18  ;;  %v382_v18 = vld [vmem:[#allocation5 + $0x230] sm:$0xff] }
  0x72   : > { %665 = vmatmul.f32.gmra.mxu2 %v2153_v44  ;;  %973 = vmatpush.msrb.mxu3 %v417_v19  ;;  %v478_v19 = vld [vmem:[#allocation5 + $0x530] sm:$0xff] }
  0x73   : > { %730 = vmatmul.f32.gmra.mxu3 %v2158_v45  ;;  %778 = vmatpush.msrb.mxu0 %v320_v22  ;;  %v377_v22 = vld [vmem:[#allocation5 + $0x208] sm:$0xff] }
  0x74   : > { %843 = vmatpush.msrb.mxu1 %v416_v23  ;;  %909 = vmatpush.msrb.mxu2 %v315_v26  ;;  %v473_v23 = vld [vmem:[#allocation5 + $0x508] sm:$0xff] }
  0x75   : > { %974 = vmatpush.msrb.mxu3 %v411_v27  ;;  %779 = vmatpush.msrb.mxu0 %v314_v30 }
  0x76   : > { %535 = vmatmul.f32.gmra.mxu0 %v2153_v44  ;;  %844 = vmatpush.msrb.mxu1 %v410_v31 }
  0x77   : > { %600 = vmatmul.f32.gmra.mxu1 %v2158_v45  ;;  %1154 = vmatpush.msra.mxu2 %v407_v34  ;;  %v376_v34 = vld [vmem:[#allocation5 + $0x200] sm:$0xff] }
  0x78   : > { %1219 = vmatpush.msra.mxu3 %v503_v35  ;;  %1024 = vmatpush.msra.mxu0 %v406_v40  ;;  %v472_v35 = vld [vmem:[#allocation5 + $0x500] sm:$0xff]  ;;  %v371_v40 = vld [vmem:[#allocation5 + $0x1d8] sm:$0xff] }
  0x79   : > { %1089 = vmatpush.msra.mxu1 %v502_v41  ;;  %1155 = vmatpush.msra.mxu2 %v401_v42  ;;  %v467_v41 = vld [vmem:[#allocation5 + $0x4d8] sm:$0xff] }
  0x7a   : > { %668 = vmatmul.f32.gmra.mxu2 %v2163_v50  ;;  %1220 = vmatpush.msra.mxu3 %v497_v43 }
  0x7b   : > { %733 = vmatmul.f32.gmra.mxu3 %v2168_v51  ;;  %1025 = vmatpush.msra.mxu0 %v400_v48 }
  0x7c   : > { %1090 = vmatpush.msra.mxu1 %v496_v49  ;;  %1156 = vmatpush.msra.mxu2 %v395_v52  ;;  %v370_v52 = vld [vmem:[#allocation5 + $0x1d0] sm:$0xff] }
  0x7d   : > { %1221 = vmatpush.msra.mxu3 %v491_v53  ;;  %1026 = vmatpush.msra.mxu0 %v394_v58  ;;  %v466_v53 = vld [vmem:[#allocation5 + $0x4d0] sm:$0xff]  ;;  %v365_v58 = vld [vmem:[#allocation5 + $0x1a8] sm:$0xff] }
  0x7e   : > { %538 = vmatmul.f32.gmra.mxu0 %v2163_v50  ;;  %1091 = vmatpush.msra.mxu1 %v490_v59  ;;  %v461_v59 = vld [vmem:[#allocation5 + $0x4a8] sm:$0xff] }
  0x7f   : > { %603 = vmatmul.f32.gmra.mxu1 %v2168_v51  ;;  %1157 = vmatpush.msra.mxu2 %v389_v62 }
  0x80   : > { %1222 = vmatpush.msra.mxu3 %v485_v63  ;;  %1027 = vmatpush.msra.mxu0 %v388_v2 }
  0x81   : > { %1092 = vmatpush.msra.mxu1 %v484_v3  ;;  %1158 = vmatpush.msra.mxu2 %v383_v4  ;;  %v364_v4 = vld [vmem:[#allocation5 + $0x1a0] sm:$0xff] }
  0x82   : > { %671 = vmatmul.f32.gmra.mxu2 %v2173_v56  ;;  %1223 = vmatpush.msra.mxu3 %v479_v5  ;;  %v460_v5 = vld [vmem:[#allocation5 + $0x4a0] sm:$0xff] }
  0x83   : > { %736 = vmatmul.f32.gmra.mxu3 %v2178_v57  ;;  %1028 = vmatpush.msra.mxu0 %v382_v18  ;;  %v358_v18 = vld [vmem:[#allocation5 + $0x170] sm:$0xff] }
  0x84   : > { %1093 = vmatpush.msra.mxu1 %v478_v19  ;;  %1159 = vmatpush.msra.mxu2 %v377_v22  ;;  %v454_v19 = vld [vmem:[#allocation5 + $0x470] sm:$0xff]  ;;  %v353_v22 = vld [vmem:[#allocation5 + $0x148] sm:$0xff] }
  0x85   : > { %1224 = vmatpush.msra.mxu3 %v473_v23  ;;  %1029 = vmatpush.msra.mxu0 %v376_v34  ;;  %v449_v23 = vld [vmem:[#allocation5 + $0x448] sm:$0xff]  ;;  %v448_v34 = vld [vmem:[#allocation5 + $0x440] sm:$0xff] }
  0x86   : > { %541 = vmatmul.f32.gmra.mxu0 %v2173_v56  ;;  %1094 = vmatpush.msra.mxu1 %v472_v35  ;;  %v347_v35 = vld [vmem:[#allocation5 + $0x118] sm:$0xff] }
  0x87   : > { %606 = vmatmul.f32.gmra.mxu1 %v2178_v57  ;;  %1160 = vmatpush.msra.mxu2 %v371_v40  ;;  %v443_v40 = vld [vmem:[#allocation5 + $0x418] sm:$0xff] }
  0x88   : > { %1225 = vmatpush.msra.mxu3 %v467_v41  ;;  %1030 = vmatpush.msra.mxu0 %v370_v52  ;;  %v442_v52 = vld [vmem:[#allocation5 + $0x410] sm:$0xff] }
  0x89   : > { %1095 = vmatpush.msra.mxu1 %v466_v53  ;;  %1161 = vmatpush.msra.mxu2 %v365_v58  ;;  %v341_v53 = vld [vmem:[#allocation5 + $0xe8] sm:$0xff] }
  0x8a   : > { %674 = vmatmul.f32.gmra.mxu2 %v2183_v0  ;;  %1226 = vmatpush.msra.mxu3 %v461_v59  ;;  %v437_v58 = vld [vmem:[#allocation5 + $0x3e8] sm:$0xff] }
  0x8b   : > { %739 = vmatmul.f32.gmra.mxu3 %v2188_v1  ;;  %1031 = vmatpush.msra.mxu0 %v364_v4  ;;  %v436_v4 = vld [vmem:[#allocation5 + $0x3e0] sm:$0xff] }
  0x8c   : > { %1096 = vmatpush.msra.mxu1 %v460_v5  ;;  %v335_v5 = vld [vmem:[#allocation5 + $0xb8] sm:$0xff] }
  0x8d   : > { %1032 = vmatpush.msra.mxu0 %v358_v18  ;;  %v430_v18 = vld [vmem:[#allocation5 + $0x3b0] sm:$0xff] }
  0x8e   : > { %544 = vmatmul.f32.gmra.mxu0 %v2183_v0  ;;  %1097 = vmatpush.msra.mxu1 %v454_v19  ;;  %v329_v19 = vld [vmem:[#allocation5 + $0x88] sm:$0xff] }
  0x8f   : > { %609 = vmatmul.f32.gmra.mxu1 %v2188_v1 }
  0x90   : > { %1098 = vmatpush.msra.mxu1 %v448_v34  ;;  %v323_v34 = vld [vmem:[#allocation5 + $0x58] sm:$0xff] }
  0x92   : > { %677 = vmatmul.f32.gmra.mxu2 %v2193_v6  ;;  %1099 = vmatpush.msra.mxu1 %v442_v52  ;;  %v317_v52 = vld [vmem:[#allocation5 + $0x28] sm:$0xff] }
  0x93   : > { %742 = vmatmul.f32.gmra.mxu3 %v2198_v7 }
  0x94   : > { %1100 = vmatpush.msra.mxu1 %v436_v4 }
  0x96   : > { %547 = vmatmul.f32.gmra.mxu0 %v2193_v6  ;;  %1101 = vmatpush.msra.mxu1 %v430_v18 }
  0x97   : > { %612 = vmatmul.f32.gmra.mxu1 %v2198_v7 }
  0x9a   : > { %680 = vmatmul.f32.gmra.mxu2 %v2203_v14 }
  0x9b   : > { %745 = vmatmul.f32.gmra.mxu3 %v2208_v15 }
  0x9e   : > { %550 = vmatmul.f32.gmra.mxu0 %v2203_v14 }
  0x9f   : > { %615 = vmatmul.f32.gmra.mxu1 %v2208_v15 }
  0xa2   : > { %683 = vmatmul.f32.gmra.mxu2 %v2213_v20 }
  0xa3   : > { %748 = vmatmul.f32.gmra.mxu3 %v2218_v21 }
  0xa6   : > { %553 = vmatmul.f32.gmra.mxu0 %v2213_v20 }
  0xa7   : > { %618 = vmatmul.f32.gmra.mxu1 %v2218_v21 }
  0xaa   : > { %686 = vmatmul.f32.gmra.mxu2 %v2223_v28 }
  0xab   : > { %751 = vmatmul.f32.gmra.mxu3 %v2228_v29 }
  0xae   : > { %556 = vmatmul.f32.gmra.mxu0 %v2223_v28 }
  0xaf   : > { %621 = vmatmul.f32.gmra.mxu1 %v2228_v29 }
  0xb2   : > { %689 = vmatmul.f32.gmra.mxu2 %v2235_v36 }
  0xb3   : > { %754 = vmatmul.f32.gmra.mxu3 %v2238_v37 }
  0xb6   : > { %559 = vmatmul.f32.gmra.mxu0 %v2235_v36 }
  0xb7   : > { %624 = vmatmul.f32.gmra.mxu1 %v2238_v37 }
  0xba   : > { %692 = vmatmul.f32.gmra.mxu2 %v2245_v46 }
  0xbb   : > { %757 = vmatmul.f32.gmra.mxu3 %v2248_v47 }
  0xbe   : > { %562 = vmatmul.f32.gmra.mxu0 %v2245_v46 }
  0xbf   : > { %627 = vmatmul.f32.gmra.mxu1 %v2248_v47 }
  0xc2   : > { %695 = vmatmul.f32.gmra.mxu2 %v2255_v54 }
  0xc3   : > { %760 = vmatmul.f32.gmra.mxu3 %v2258_v55 }
  0xc6   : > { %565 = vmatmul.f32.gmra.mxu0 %v2255_v54 }
  0xc7   : > { %630 = vmatmul.f32.gmra.mxu1 %v2258_v55 }
  0xca   : > { %910 = vmatmul.f32.vlgmr.msrb.gmra.mxu2 %v2105_v60 }
  0xcb   : > { %975 = vmatmul.f32.vlgmr.msrb.gmra.mxu3 %v2108_v61  ;;  %v521_v8 = vpop.f32.mrf.mxu0 }
  0xcc   : > { %v586_v9 = vpop.f32.mrf.mxu1 }
  0xcd   : > { %v587_v12 = vadd.f32 %v586_v9, %v521_v8  ;;  %v651_v13 = vpop.f32.mrf.mxu2  ;;  %v359_v8 = vld [vmem:[#allocation5 + $0x178] sm:$0xff] }
  0xce   : > { %v716_v16 = vpop.f32.mrf.mxu3  ;;  %780 = vmatmul.f32.vlgmr.msrb.gmra.mxu0 %v2105_v60  ;;  %v455_v9 = vld [vmem:[#allocation5 + $0x478] sm:$0xff]  ;;  %1162 = vmatpush.msra.mxu2 %v359_v8 }
  0xcf   : > { %v717_v17 = vadd.f32 %v716_v16, %v651_v13  ;;  %1284 = vst [vmem:[%s2267_s1] sm:$0xff] %v587_v12  ;;  %845 = vmatmul.f32.vlgmr.msrb.gmra.mxu1 %v2108_v61  ;;  %1227 = vmatpush.msra.mxu3 %v455_v9  ;;  %v431_v8 = vld [vmem:[#allocation5 + $0x3b8] sm:$0xff] }
  0xd0   : > { %1163 = vmatpush.msra.mxu2 %v353_v22  ;;  %v425_v22 = vld [vmem:[#allocation5 + $0x388] sm:$0xff] }
  0xd1   : > { %1285 = vst [vmem:[%s2267_s1 + $0x8] sm:$0xff] %v717_v17  ;;  %1228 = vmatpush.msra.mxu3 %v449_v23 }
  0xd2   : > { %913 = vmatmul.f32.gmra.mxu2 %v2115_v10 }
  0xd3   : > { %978 = vmatmul.f32.gmra.mxu3 %v2118_v11  ;;  %v524_v26 = vpop.f32.mrf.mxu0  ;;  %1164 = vmatpush.msra.mxu2 %v347_v35  ;;  %v419_v35 = vld [vmem:[#allocation5 + $0x358] sm:$0xff] }
  0xd4   : > { %v589_v27 = vpop.f32.mrf.mxu1  ;;  %1229 = vmatpush.msra.mxu3 %v443_v40 }
  0xd5   : > { %v590_v60 = vadd.f32 %v589_v27, %v524_v26  ;;  %v654_v30 = vpop.f32.mrf.mxu2  ;;  %1165 = vmatpush.msra.mxu2 %v341_v53  ;;  %v413_v53 = vld [vmem:[#allocation5 + $0x328] sm:$0xff] }
  0xd6   : > { %v719_v61 = vpop.f32.mrf.mxu3  ;;  %783 = vmatmul.f32.gmra.mxu0 %v2115_v10  ;;  %1230 = vmatpush.msra.mxu3 %v437_v58 }
  0xd7   : > { %v720_v31 = vadd.f32 %v719_v61, %v654_v30  ;;  %1286 = vst [vmem:[%s2267_s1 + $0x10] sm:$0xff] %v590_v60  ;;  %848 = vmatmul.f32.gmra.mxu1 %v2118_v11  ;;  %1166 = vmatpush.msra.mxu2 %v335_v5 }
  0xd8   : > { %1231 = vmatpush.msra.mxu3 %v431_v8 }
  0xd9   : > { %1287 = vst [vmem:[%s2267_s1 + $0x18] sm:$0xff] %v720_v31  ;;  %v352_v31 = vld [vmem:[#allocation5 + $0x140] sm:$0xff]  ;;  %1167 = vmatpush.msra.mxu2 %v329_v19 }
  0xda   : > { %916 = vmatmul.f32.gmra.mxu2 %v2125_v24  ;;  %1033 = vmatpush.msra.mxu0 %v352_v31  ;;  %v424_v31 = vld [vmem:[#allocation5 + $0x380] sm:$0xff] }
  0xdb   : > { %981 = vmatmul.f32.gmra.mxu3 %v2128_v25  ;;  %v527_v42 = vpop.f32.mrf.mxu0  ;;  %1102 = vmatpush.msra.mxu1 %v424_v31 }
  0xdc   : > { %v592_v43 = vpop.f32.mrf.mxu1  ;;  %1232 = vmatpush.msra.mxu3 %v425_v22  ;;  %1168 = vmatpush.msra.mxu2 %v323_v34 }
  0xdd   : > { %v593_v10 = vadd.f32 %v592_v43, %v527_v42  ;;  %v657_v48 = vpop.f32.mrf.mxu2 }
  0xde   : > { %v722_v11 = vpop.f32.mrf.mxu3  ;;  %786 = vmatmul.f32.gmra.mxu0 %v2125_v24  ;;  %1233 = vmatpush.msra.mxu3 %v419_v35 }
  0xdf   : > { %v723_v49 = vadd.f32 %v722_v11, %v657_v48  ;;  %1288 = vst [vmem:[%s2267_s1 + $0x20] sm:$0xff] %v593_v10  ;;  %851 = vmatmul.f32.gmra.mxu1 %v2128_v25  ;;  %1169 = vmatpush.msra.mxu2 %v317_v52 }
  0xe0   : > { %1234 = vmatpush.msra.mxu3 %v413_v53  ;;  %v1735_v53 = vld [vmem:[%s2094_s25 + $0x10] sm:$0xff] }
  0xe1   : > { %1289 = vst [vmem:[%s2267_s1 + $0x28] sm:$0xff] %v723_v49  ;;  %v346_v49 = vld [vmem:[#allocation5 + $0x110] sm:$0xff] }
  0xe2   : > { %919 = vmatmul.f32.gmra.mxu2 %v2133_v32  ;;  %1034 = vmatpush.msra.mxu0 %v346_v49  ;;  %v418_v49 = vld [vmem:[#allocation5 + $0x350] sm:$0xff] }
  0xe3   : > { %984 = vmatmul.f32.gmra.mxu3 %v2138_v33  ;;  %v530_v62 = vpop.f32.mrf.mxu0  ;;  %1103 = vmatpush.msra.mxu1 %v418_v49 }
  0xe4   : > { %v595_v63 = vpop.f32.mrf.mxu1 }
  0xe5   : > { %v596_v24 = vadd.f32 %v595_v63, %v530_v62  ;;  %v660_v2 = vpop.f32.mrf.mxu2 }
  0xe6   : > { %v725_v25 = vpop.f32.mrf.mxu3  ;;  %789 = vmatmul.f32.gmra.mxu0 %v2133_v32 }
  0xe7   : > { %v726_v3 = vadd.f32 %v725_v25, %v660_v2  ;;  %1290 = vst [vmem:[%s2267_s1 + $0x30] sm:$0xff] %v596_v24  ;;  %854 = vmatmul.f32.gmra.mxu1 %v2138_v33 }
  0xe9   : > { %1291 = vst [vmem:[%s2267_s1 + $0x38] sm:$0xff] %v726_v3  ;;  %v340_v3 = vld [vmem:[#allocation5 + $0xe0] sm:$0xff] }
  0xea   : > { %922 = vmatmul.f32.gmra.mxu2 %v2143_v38  ;;  %1035 = vmatpush.msra.mxu0 %v340_v3  ;;  %v412_v3 = vld [vmem:[#allocation5 + $0x320] sm:$0xff] }
  0xeb   : > { %987 = vmatmul.f32.gmra.mxu3 %v2148_v39  ;;  %v533_v12 = vpop.f32.mrf.mxu0  ;;  %1104 = vmatpush.msra.mxu1 %v412_v3  ;;  %v1737_v3 = vld [vmem:[%s2094_s25 + $0x20] sm:$0xff] }
  0xec   : > { %v598_v13 = vpop.f32.mrf.mxu1 }
  0xed   : > { %v599_v32 = vadd.f32 %v598_v13, %v533_v12  ;;  %v663_v16 = vpop.f32.mrf.mxu2 }
  0xee   : > { %v728_v33 = vpop.f32.mrf.mxu3  ;;  %792 = vmatmul.f32.gmra.mxu0 %v2143_v38 }
  0xef   : > { %v729_v17 = vadd.f32 %v728_v33, %v663_v16  ;;  %1292 = vst [vmem:[%s2267_s1 + $0x40] sm:$0xff] %v599_v32  ;;  %857 = vmatmul.f32.gmra.mxu1 %v2148_v39 }
  0xf1   : > { %1293 = vst [vmem:[%s2267_s1 + $0x48] sm:$0xff] %v729_v17  ;;  %v334_v17 = vld [vmem:[#allocation5 + $0xb0] sm:$0xff] }
  0xf2   : > { %925 = vmatmul.f32.gmra.mxu2 %v2153_v44  ;;  %1036 = vmatpush.msra.mxu0 %v334_v17 }
  0xf3   : > { %990 = vmatmul.f32.gmra.mxu3 %v2158_v45  ;;  %v536_v26 = vpop.f32.mrf.mxu0 }
  0xf4   : > { %v601_v27 = vpop.f32.mrf.mxu1 }
  0xf5   : > { %v602_v38 = vadd.f32 %v601_v27, %v536_v26  ;;  %v666_v60 = vpop.f32.mrf.mxu2 }
  0xf6   : > { %v731_v30 = vpop.f32.mrf.mxu3  ;;  %795 = vmatmul.f32.gmra.mxu0 %v2153_v44 }
  0xf7   : > { %v732_v61 = vadd.f32 %v731_v30, %v666_v60  ;;  %1294 = vst [vmem:[%s2267_s1 + $0x50] sm:$0xff] %v602_v38  ;;  %860 = vmatmul.f32.gmra.mxu1 %v2158_v45 }
  0xf9   : > { %1295 = vst [vmem:[%s2267_s1 + $0x58] sm:$0xff] %v732_v61  ;;  %v328_v61 = vld [vmem:[#allocation5 + $0x80] sm:$0xff] }
  0xfa   : > { %928 = vmatmul.f32.gmra.mxu2 %v2163_v50  ;;  %1037 = vmatpush.msra.mxu0 %v328_v61 }
  0xfb   : > { %993 = vmatmul.f32.gmra.mxu3 %v2168_v51  ;;  %v539_v41 = vpop.f32.mrf.mxu0 }
  0xfc   : > { %v604_v42 = vpop.f32.mrf.mxu1 }
  0xfd   : > { %v605_v43 = vadd.f32 %v604_v42, %v539_v41  ;;  %v669_v10 = vpop.f32.mrf.mxu2 }
  0xfe   : > { %v734_v48 = vpop.f32.mrf.mxu3  ;;  %798 = vmatmul.f32.gmra.mxu0 %v2163_v50 }
  0xff   : > { %v735_v11 = vadd.f32 %v734_v48, %v669_v10  ;;  %1296 = vst [vmem:[%s2267_s1 + $0x60] sm:$0xff] %v605_v43  ;;  %863 = vmatmul.f32.gmra.mxu1 %v2168_v51 }
 0x101   : > { %1297 = vst [vmem:[%s2267_s1 + $0x68] sm:$0xff] %v735_v11  ;;  %v322_v11 = vld [vmem:[#allocation5 + $0x50] sm:$0xff] }
 0x102   : > { %931 = vmatmul.f32.gmra.mxu2 %v2173_v56  ;;  %1038 = vmatpush.msra.mxu0 %v322_v11 }
 0x103   : > { %996 = vmatmul.f32.gmra.mxu3 %v2178_v57  ;;  %v542_v59 = vpop.f32.mrf.mxu0 }
 0x104   : > { %v607_v62 = vpop.f32.mrf.mxu1 }
 0x105   : > { %v608_v63 = vadd.f32 %v607_v62, %v542_v59  ;;  %v672_v24 = vpop.f32.mrf.mxu2 }
 0x106   : > { %v737_v2 = vpop.f32.mrf.mxu3  ;;  %801 = vmatmul.f32.gmra.mxu0 %v2173_v56 }
 0x107   : > { %v738_v25 = vadd.f32 %v737_v2, %v672_v24  ;;  %1298 = vst [vmem:[%s2267_s1 + $0x70] sm:$0xff] %v608_v63  ;;  %866 = vmatmul.f32.gmra.mxu1 %v2178_v57 }
 0x109   : > { %1299 = vst [vmem:[%s2267_s1 + $0x78] sm:$0xff] %v738_v25  ;;  %v316_v25 = vld [vmem:[#allocation5 + $0x20] sm:$0xff] }
 0x10a   : > { %934 = vmatmul.f32.gmra.mxu2 %v2183_v0  ;;  %1039 = vmatpush.msra.mxu0 %v316_v25 }
 0x10b   : > { %999 = vmatmul.f32.gmra.mxu3 %v2188_v1  ;;  %v545_v9 = vpop.f32.mrf.mxu0 }
 0x10c   : > { %v610_v12 = vpop.f32.mrf.mxu1 }
 0x10d   : > { %v611_v13 = vadd.f32 %v610_v12, %v545_v9  ;;  %v675_v32 = vpop.f32.mrf.mxu2 }
 0x10e   : > { %v740_v16 = vpop.f32.mrf.mxu3  ;;  %804 = vmatmul.f32.gmra.mxu0 %v2183_v0 }
 0x10f   : > { %v741_v33 = vadd.f32 %v740_v16, %v675_v32  ;;  %1300 = vst [vmem:[%s2267_s1 + $0x80] sm:$0xff] %v611_v13  ;;  %869 = vmatmul.f32.gmra.mxu1 %v2188_v1 }
 0x111   : > { %1301 = vst [vmem:[%s2267_s1 + $0x88] sm:$0xff] %v741_v33 }
 0x112   : > { %937 = vmatmul.f32.gmra.mxu2 %v2193_v6 }
 0x113   : > { %1002 = vmatmul.f32.gmra.mxu3 %v2198_v7  ;;  %v548_v23 = vpop.f32.mrf.mxu0 }
 0x114   : > { %v613_v26 = vpop.f32.mrf.mxu1 }
 0x115   : > { %v614_v27 = vadd.f32 %v613_v26, %v548_v23  ;;  %v678_v38 = vpop.f32.mrf.mxu2 }
 0x116   : > { %v743_v60 = vpop.f32.mrf.mxu3  ;;  %807 = vmatmul.f32.gmra.mxu0 %v2193_v6 }
 0x117   : > { %v744_v30 = vadd.f32 %v743_v60, %v678_v38  ;;  %1302 = vst [vmem:[%s2267_s1 + $0x90] sm:$0xff] %v614_v27  ;;  %872 = vmatmul.f32.gmra.mxu1 %v2198_v7 }
 0x119   : > { %1303 = vst [vmem:[%s2267_s1 + $0x98] sm:$0xff] %v744_v30 }
 0x11a   : > { %940 = vmatmul.f32.gmra.mxu2 %v2203_v14 }
 0x11b   : > { %1005 = vmatmul.f32.gmra.mxu3 %v2208_v15  ;;  %v551_v40 = vpop.f32.mrf.mxu0 }
 0x11c   : > { %v616_v41 = vpop.f32.mrf.mxu1 }
 0x11d   : > { %v617_v42 = vadd.f32 %v616_v41, %v551_v40  ;;  %v681_v43 = vpop.f32.mrf.mxu2  ;;  %v1733_v41 = vld [vmem:[%s2094_s25] sm:$0xff] }
 0x11e   : > { %v746_v10 = vpop.f32.mrf.mxu3  ;;  %810 = vmatmul.f32.gmra.mxu0 %v2203_v14 }
 0x11f   : > { %v747_v48 = vadd.f32 %v746_v10, %v681_v43  ;;  %1304 = vst [vmem:[%s2267_s1 + $0xa0] sm:$0xff] %v617_v42  ;;  %875 = vmatmul.f32.gmra.mxu1 %v2208_v15  ;;  %v1734_v42 = vld [vmem:[%s2094_s25 + $0x8] sm:$0xff] }
 0x121   : > { %1305 = vst [vmem:[%s2267_s1 + $0xa8] sm:$0xff] %v747_v48 }
 0x122   : > { %943 = vmatmul.f32.gmra.mxu2 %v2213_v20 }
 0x123   : > { %1008 = vmatmul.f32.gmra.mxu3 %v2218_v21  ;;  %v554_v58 = vpop.f32.mrf.mxu0 }
 0x124   : > { %v619_v59 = vpop.f32.mrf.mxu1 }
 0x125   : > { %v620_v62 = vadd.f32 %v619_v59, %v554_v58  ;;  %v684_v63 = vpop.f32.mrf.mxu2  ;;  %v1736_v58 = vld [vmem:[%s2094_s25 + $0x18] sm:$0xff] }
 0x126   : > { %v749_v24 = vpop.f32.mrf.mxu3  ;;  %813 = vmatmul.f32.gmra.mxu0 %v2213_v20 }
 0x127   : > { %v750_v2 = vadd.f32 %v749_v24, %v684_v63  ;;  %1306 = vst [vmem:[%s2267_s1 + $0xb0] sm:$0xff] %v620_v62  ;;  %878 = vmatmul.f32.gmra.mxu1 %v2218_v21 }
 0x129   : > { %1307 = vst [vmem:[%s2267_s1 + $0xb8] sm:$0xff] %v750_v2 }
 0x12a   : > { %946 = vmatmul.f32.gmra.mxu2 %v2223_v28 }
 0x12b   : > { %1011 = vmatmul.f32.gmra.mxu3 %v2228_v29  ;;  %v557_v4 = vpop.f32.mrf.mxu0 }
 0x12c   : > { %v622_v5 = vpop.f32.mrf.mxu1 }
 0x12d   : > { %v623_v8 = vadd.f32 %v622_v5, %v557_v4  ;;  %v687_v9 = vpop.f32.mrf.mxu2  ;;  %v1738_v4 = vld [vmem:[%s2094_s25 + $0x28] sm:$0xff] }
 0x12e   : > { %v752_v12 = vpop.f32.mrf.mxu3  ;;  %816 = vmatmul.f32.gmra.mxu0 %v2223_v28 }
 0x12f   : > { %v753_v13 = vadd.f32 %v752_v12, %v687_v9  ;;  %1308 = vst [vmem:[%s2267_s1 + $0xc0] sm:$0xff] %v623_v8  ;;  %881 = vmatmul.f32.gmra.mxu1 %v2228_v29 }
 0x131   : > { %1309 = vst [vmem:[%s2267_s1 + $0xc8] sm:$0xff] %v753_v13 }
 0x132   : > { %949 = vmatmul.f32.gmra.mxu2 %v2235_v36 }
 0x133   : > { %1014 = vmatmul.f32.gmra.mxu3 %v2238_v37  ;;  %v560_v32 = vpop.f32.mrf.mxu0 }
 0x134   : > { %v625_v16 = vpop.f32.mrf.mxu1 }
 0x135   : > { %v626_v33 = vadd.f32 %v625_v16, %v560_v32  ;;  %v690_v17 = vpop.f32.mrf.mxu2  ;;  %v1739_v16 = vld [vmem:[%s2094_s25 + $0x30] sm:$0xff] }
 0x136   : > { %v755_v18 = vpop.f32.mrf.mxu3  ;;  %819 = vmatmul.f32.gmra.mxu0 %v2235_v36 }
 0x137   : > { %v756_v19 = vadd.f32 %v755_v18, %v690_v17  ;;  %1310 = vst [vmem:[%s2267_s1 + $0xd0] sm:$0xff] %v626_v33  ;;  %884 = vmatmul.f32.gmra.mxu1 %v2238_v37  ;;  %v1740_v33 = vld [vmem:[%s2094_s25 + $0x38] sm:$0xff] }
 0x139   : > { %1311 = vst [vmem:[%s2267_s1 + $0xd8] sm:$0xff] %v756_v19 }
 0x13a   : > { %952 = vmatmul.f32.gmra.mxu2 %v2245_v46 }
 0x13b   : > { %1017 = vmatmul.f32.gmra.mxu3 %v2248_v47  ;;  %v563_v22 = vpop.f32.mrf.mxu0 }
 0x13c   : > { %v628_v23 = vpop.f32.mrf.mxu1 }
 0x13d   : > { %v629_v26 = vadd.f32 %v628_v23, %v563_v22  ;;  %v693_v27 = vpop.f32.mrf.mxu2 }
 0x13e   : > { %v758_v38 = vpop.f32.mrf.mxu3  ;;  %822 = vmatmul.f32.gmra.mxu0 %v2245_v46 }
 0x13f   : > { %v759_v60 = vadd.f32 %v758_v38, %v693_v27  ;;  %1312 = vst [vmem:[%s2267_s1 + $0xe0] sm:$0xff] %v629_v26  ;;  %887 = vmatmul.f32.gmra.mxu1 %v2248_v47  ;;  %v1741_v27 = vld [vmem:[%s2094_s25 + $0x40] sm:$0xff] }
 0x141   : > { %1313 = vst [vmem:[%s2267_s1 + $0xe8] sm:$0xff] %v759_v60 }
 0x142   : > { %955 = vmatmul.f32.gmra.mxu2 %v2255_v54 }
 0x143   : > { %1020 = vmatmul.f32.gmra.mxu3 %v2258_v55  ;;  %v566_v30 = vpop.f32.mrf.mxu0 }
 0x144   : > { %v631_v61 = vpop.f32.mrf.mxu1 }
 0x145   : > { %v632_v31 = vadd.f32 %v631_v61, %v566_v30  ;;  %v696_v34 = vpop.f32.mrf.mxu2 }
 0x146   : > { %v761_v35 = vpop.f32.mrf.mxu3  ;;  %825 = vmatmul.f32.gmra.mxu0 %v2255_v54 }
 0x147   : > { %v762_v40 = vadd.f32 %v761_v35, %v696_v34  ;;  %1314 = vst [vmem:[%s2267_s1 + $0xf0] sm:$0xff] %v632_v31  ;;  %890 = vmatmul.f32.gmra.mxu1 %v2258_v55  ;;  %v1742_v35 = vld [vmem:[%s2094_s25 + $0x48] sm:$0xff] }
 0x149   : > { %1315 = vst [vmem:[%s2267_s1 + $0xf8] sm:$0xff] %v762_v40 }
 0x14a   : > { %1170 = vmatmul.f32.vlgmr.msra.gmra.mxu2 %v1733_v41 }
 0x14b   : > { %1235 = vmatmul.f32.vlgmr.msra.gmra.mxu3 %v1734_v42  ;;  %v781_v43 = vpop.f32.mrf.mxu0 }
 0x14c   : > { %v846_v10 = vpop.f32.mrf.mxu1 }
 0x14d   : > { %v847_v48 = vadd.f32 %v846_v10, %v781_v43  ;;  %v911_v11 = vpop.f32.mrf.mxu2 }
 0x14e   : > { %v976_v49 = vpop.f32.mrf.mxu3  ;;  %1040 = vmatmul.f32.vlgmr.msra.gmra.mxu0 %v1733_v41 }
 0x14f   : > { %v977_v52 = vadd.f32 %v976_v49, %v911_v11  ;;  %1316 = vst [vmem:[%s2366_s22] sm:$0xff] %v847_v48  ;;  %1105 = vmatmul.f32.vlgmr.msra.gmra.mxu1 %v1734_v42  ;;  %v1743_v48 = vld [vmem:[%s2094_s25 + $0x50] sm:$0xff]  ;;  %v1744_v11 = vld [vmem:[%s2094_s25 + $0x58] sm:$0xff] }
 0x151   : > { %1317 = vst [vmem:[%s2366_s22 + $0x8] sm:$0xff] %v977_v52 }
 0x152   : > { %1173 = vmatmul.f32.gmra.mxu2 %v1735_v53 }
 0x153   : > { %1238 = vmatmul.f32.gmra.mxu3 %v1736_v58  ;;  %v784_v59 = vpop.f32.mrf.mxu0 }
 0x154   : > { %v849_v62 = vpop.f32.mrf.mxu1 }
 0x155   : > { %v850_v63 = vadd.f32 %v849_v62, %v784_v59  ;;  %v914_v24 = vpop.f32.mrf.mxu2  ;;  %v1745_v59 = vld [vmem:[%s2094_s25 + $0x60] sm:$0xff]  ;;  %v1746_v62 = vld [vmem:[%s2094_s25 + $0x68] sm:$0xff] }
 0x156   : > { %v979_v2 = vpop.f32.mrf.mxu3  ;;  %1043 = vmatmul.f32.gmra.mxu0 %v1735_v53 }
 0x157   : > { %v980_v25 = vadd.f32 %v979_v2, %v914_v24  ;;  %1318 = vst [vmem:[%s2366_s22 + $0x10] sm:$0xff] %v850_v63  ;;  %1108 = vmatmul.f32.gmra.mxu1 %v1736_v58 }
 0x159   : > { %1319 = vst [vmem:[%s2366_s22 + $0x18] sm:$0xff] %v980_v25 }
 0x15a   : > { %1176 = vmatmul.f32.gmra.mxu2 %v1737_v3 }
 0x15b   : > { %1241 = vmatmul.f32.gmra.mxu3 %v1738_v4  ;;  %v787_v5 = vpop.f32.mrf.mxu0 }
 0x15c   : > { %v852_v8 = vpop.f32.mrf.mxu1 }
 0x15d   : > { %v853_v9 = vadd.f32 %v852_v8, %v787_v5  ;;  %v917_v12 = vpop.f32.mrf.mxu2 }
 0x15e   : > { %v982_v13 = vpop.f32.mrf.mxu3  ;;  %1046 = vmatmul.f32.gmra.mxu0 %v1737_v3  ;;  %v1747_v3 = vld [vmem:[%s2094_s25 + $0x70] sm:$0xff] }
 0x15f   : > { %v983_v32 = vadd.f32 %v982_v13, %v917_v12  ;;  %1320 = vst [vmem:[%s2366_s22 + $0x20] sm:$0xff] %v853_v9  ;;  %1111 = vmatmul.f32.gmra.mxu1 %v1738_v4  ;;  %v1748_v4 = vld [vmem:[%s2094_s25 + $0x78] sm:$0xff]  ;;  %v1749_v13 = vld [vmem:[%s2094_s25 + $0x80] sm:$0xff] }
 0x161   : > { %1321 = vst [vmem:[%s2366_s22 + $0x28] sm:$0xff] %v983_v32 }
 0x162   : > { %1179 = vmatmul.f32.gmra.mxu2 %v1739_v16 }
 0x163   : > { %1244 = vmatmul.f32.gmra.mxu3 %v1740_v33  ;;  %v790_v17 = vpop.f32.mrf.mxu0 }
 0x164   : > { %v855_v18 = vpop.f32.mrf.mxu1 }
 0x165   : > { %v856_v19 = vadd.f32 %v855_v18, %v790_v17  ;;  %v920_v22 = vpop.f32.mrf.mxu2 }
 0x166   : > { %v985_v23 = vpop.f32.mrf.mxu3  ;;  %1049 = vmatmul.f32.gmra.mxu0 %v1739_v16 }
 0x167   : > { %v986_v26 = vadd.f32 %v985_v23, %v920_v22  ;;  %1322 = vst [vmem:[%s2366_s22 + $0x30] sm:$0xff] %v856_v19  ;;  %1114 = vmatmul.f32.gmra.mxu1 %v1740_v33 }
 0x169   : > { %1323 = vst [vmem:[%s2366_s22 + $0x38] sm:$0xff] %v986_v26 }
 0x16a   : > { %1182 = vmatmul.f32.gmra.mxu2 %v1741_v27 }
 0x16b   : > { %1247 = vmatmul.f32.gmra.mxu3 %v2148_v39  ;;  %v793_v38 = vpop.f32.mrf.mxu0 }
 0x16c   : > { %v858_v60 = vpop.f32.mrf.mxu1 }
 0x16d   : > { %v859_v30 = vadd.f32 %v858_v60, %v793_v38  ;;  %v923_v61 = vpop.f32.mrf.mxu2 }
 0x16e   : > { %v988_v31 = vpop.f32.mrf.mxu3  ;;  %1052 = vmatmul.f32.gmra.mxu0 %v1741_v27 }
 0x16f   : > { %v989_v34 = vadd.f32 %v988_v31, %v923_v61  ;;  %1324 = vst [vmem:[%s2366_s22 + $0x40] sm:$0xff] %v859_v30  ;;  %1117 = vmatmul.f32.gmra.mxu1 %v1742_v35 }
 0x171   : > { %1325 = vst [vmem:[%s2366_s22 + $0x48] sm:$0xff] %v989_v34 }
 0x172   : > { %1185 = vmatmul.f32.gmra.mxu2 %v2153_v44 }
 0x173   : > { %1250 = vmatmul.f32.gmra.mxu3 %v2158_v45  ;;  %v796_v39 = vpop.f32.mrf.mxu0 }
 0x174   : > { %v861_v40 = vpop.f32.mrf.mxu1 }
 0x175   : > { %v862_v41 = vadd.f32 %v861_v40, %v796_v39  ;;  %v926_v42 = vpop.f32.mrf.mxu2 }
 0x176   : > { %v991_v43 = vpop.f32.mrf.mxu3  ;;  %1055 = vmatmul.f32.gmra.mxu0 %v1743_v48 }
 0x177   : > { %v992_v10 = vadd.f32 %v991_v43, %v926_v42  ;;  %1326 = vst [vmem:[%s2366_s22 + $0x50] sm:$0xff] %v862_v41  ;;  %1120 = vmatmul.f32.gmra.mxu1 %v1744_v11 }
 0x179   : > { %1327 = vst [vmem:[%s2366_s22 + $0x58] sm:$0xff] %v992_v10 }
 0x17a   : > { %1188 = vmatmul.f32.gmra.mxu2 %v2163_v50 }
 0x17b   : > { %1253 = vmatmul.f32.gmra.mxu3 %v2168_v51  ;;  %v799_v44 = vpop.f32.mrf.mxu0 }
 0x17c   : > { %v864_v45 = vpop.f32.mrf.mxu1 }
 0x17d   : > { %v865_v49 = vadd.f32 %v864_v45, %v799_v44  ;;  %v929_v52 = vpop.f32.mrf.mxu2 }
 0x17e   : > { %v994_v53 = vpop.f32.mrf.mxu3  ;;  %1058 = vmatmul.f32.gmra.mxu0 %v1745_v59 }
 0x17f   : > { %v995_v58 = vadd.f32 %v994_v53, %v929_v52  ;;  %1328 = vst [vmem:[%s2366_s22 + $0x60] sm:$0xff] %v865_v49  ;;  %1123 = vmatmul.f32.gmra.mxu1 %v1746_v62 }
 0x181   : > { %1329 = vst [vmem:[%s2366_s22 + $0x68] sm:$0xff] %v995_v58 }
 0x182   : > { %1191 = vmatmul.f32.gmra.mxu2 %v2173_v56 }
 0x183   : > { %1256 = vmatmul.f32.gmra.mxu3 %v2178_v57  ;;  %v802_v50 = vpop.f32.mrf.mxu0 }
 0x184   : > { %v867_v51 = vpop.f32.mrf.mxu1 }
 0x185   : > { %v868_v63 = vadd.f32 %v867_v51, %v802_v50  ;;  %v932_v24 = vpop.f32.mrf.mxu2 }
 0x186   : > { %v997_v2 = vpop.f32.mrf.mxu3  ;;  %1061 = vmatmul.f32.gmra.mxu0 %v1747_v3 }
 0x187   : > { %v998_v25 = vadd.f32 %v997_v2, %v932_v24  ;;  %1330 = vst [vmem:[%s2366_s22 + $0x70] sm:$0xff] %v868_v63  ;;  %1126 = vmatmul.f32.gmra.mxu1 %v1748_v4 }
 0x189   : > { %1331 = vst [vmem:[%s2366_s22 + $0x78] sm:$0xff] %v998_v25 }
 0x18a   : > { %1194 = vmatmul.f32.gmra.mxu2 %v2183_v0 }
 0x18b   : > { %1259 = vmatmul.f32.gmra.mxu3 %v2188_v1  ;;  %v805_v56 = vpop.f32.mrf.mxu0 }
 0x18c   : > { %v870_v57 = vpop.f32.mrf.mxu1 }
 0x18d   : > { %v871_v5 = vadd.f32 %v870_v57, %v805_v56  ;;  %v935_v8 = vpop.f32.mrf.mxu2 }
 0x18e   : > { %v1000_v9 = vpop.f32.mrf.mxu3  ;;  %1064 = vmatmul.f32.gmra.mxu0 %v1749_v13 }
 0x18f   : > { %v1001_v12 = vadd.f32 %v1000_v9, %v935_v8  ;;  %1332 = vst [vmem:[%s2366_s22 + $0x80] sm:$0xff] %v871_v5  ;;  %1129 = vmatmul.f32.gmra.mxu1 %v2188_v1 }
 0x191   : > { %1333 = vst [vmem:[%s2366_s22 + $0x88] sm:$0xff] %v1001_v12 }
 0x192   : > { %1197 = vmatmul.f32.gmra.mxu2 %v2193_v6 }
 0x193   : > { %1262 = vmatmul.f32.gmra.mxu3 %v2198_v7  ;;  %v808_v0 = vpop.f32.mrf.mxu0 }
 0x194   : > { %v873_v32 = vpop.f32.mrf.mxu1 }
 0x195   : > { %v874_v16 = vadd.f32 %v873_v32, %v808_v0  ;;  %v938_v33 = vpop.f32.mrf.mxu2 }
 0x196   : > { %v1003_v17 = vpop.f32.mrf.mxu3  ;;  %1067 = vmatmul.f32.gmra.mxu0 %v2193_v6 }
 0x197   : > { %v1004_v18 = vadd.f32 %v1003_v17, %v938_v33  ;;  %1334 = vst [vmem:[%s2366_s22 + $0x90] sm:$0xff] %v874_v16  ;;  %1132 = vmatmul.f32.gmra.mxu1 %v2198_v7 }
 0x199   : > { %1335 = vst [vmem:[%s2366_s22 + $0x98] sm:$0xff] %v1004_v18 }
 0x19a   : > { %1200 = vmatmul.f32.gmra.mxu2 %v2203_v14 }
 0x19b   : > { %1265 = vmatmul.f32.gmra.mxu3 %v2208_v15  ;;  %v811_v1 = vpop.f32.mrf.mxu0 }
 0x19c   : > { %v876_v19 = vpop.f32.mrf.mxu1 }
 0x19d   : > { %v877_v22 = vadd.f32 %v876_v19, %v811_v1  ;;  %v941_v23 = vpop.f32.mrf.mxu2 }
 0x19e   : > { %v1006_v26 = vpop.f32.mrf.mxu3  ;;  %1070 = vmatmul.f32.gmra.mxu0 %v2203_v14 }
 0x19f   : > { %v1007_v27 = vadd.f32 %v1006_v26, %v941_v23  ;;  %1336 = vst [vmem:[%s2366_s22 + $0xa0] sm:$0xff] %v877_v22  ;;  %1135 = vmatmul.f32.gmra.mxu1 %v2208_v15 }
 0x1a1   : > { %1337 = vst [vmem:[%s2366_s22 + $0xa8] sm:$0xff] %v1007_v27 }
 0x1a2   : > { %1203 = vmatmul.f32.gmra.mxu2 %v2213_v20 }
 0x1a3   : > { %1268 = vmatmul.f32.gmra.mxu3 %v2218_v21  ;;  %v814_v6 = vpop.f32.mrf.mxu0 }
 0x1a4   : > { %v879_v7 = vpop.f32.mrf.mxu1 }
 0x1a5   : > { %v880_v38 = vadd.f32 %v879_v7, %v814_v6  ;;  %v944_v60 = vpop.f32.mrf.mxu2 }
 0x1a6   : > { %v1009_v30 = vpop.f32.mrf.mxu3  ;;  %1073 = vmatmul.f32.gmra.mxu0 %v2213_v20 }
 0x1a7   : > { %v1010_v61 = vadd.f32 %v1009_v30, %v944_v60  ;;  %1338 = vst [vmem:[%s2366_s22 + $0xb0] sm:$0xff] %v880_v38  ;;  %1138 = vmatmul.f32.gmra.mxu1 %v2218_v21 }
 0x1a9   : > { %1339 = vst [vmem:[%s2366_s22 + $0xb8] sm:$0xff] %v1010_v61 }
 0x1aa   : > { %1206 = vmatmul.f32.gmra.mxu2 %v2223_v28 }
 0x1ab   : > { %1271 = vmatmul.f32.gmra.mxu3 %v2228_v29  ;;  %v817_v14 = vpop.f32.mrf.mxu0 }
 0x1ac   : > { %v882_v15 = vpop.f32.mrf.mxu1 }
 0x1ad   : > { %v883_v31 = vadd.f32 %v882_v15, %v817_v14  ;;  %v947_v34 = vpop.f32.mrf.mxu2 }
 0x1ae   : > { %v1012_v35 = vpop.f32.mrf.mxu3  ;;  %1076 = vmatmul.f32.gmra.mxu0 %v2223_v28 }
 0x1af   : > { %v1013_v39 = vadd.f32 %v1012_v35, %v947_v34  ;;  %1340 = vst [vmem:[%s2366_s22 + $0xc0] sm:$0xff] %v883_v31  ;;  %1141 = vmatmul.f32.gmra.mxu1 %v2228_v29 }
 0x1b1   : > { %1341 = vst [vmem:[%s2366_s22 + $0xc8] sm:$0xff] %v1013_v39 }
 0x1b2   : > { %1209 = vmatmul.f32.gmra.mxu2 %v2235_v36 }
 0x1b3   : > { %1274 = vmatmul.f32.gmra.mxu3 %v2238_v37  ;;  %v820_v20 = vpop.f32.mrf.mxu0 }
 0x1b4   : > { %v885_v21 = vpop.f32.mrf.mxu1 }
 0x1b5   : > { %v886_v40 = vadd.f32 %v885_v21, %v820_v20  ;;  %v950_v41 = vpop.f32.mrf.mxu2 }
 0x1b6   : > { %v1015_v42 = vpop.f32.mrf.mxu3  ;;  %1079 = vmatmul.f32.gmra.mxu0 %v2235_v36 }
 0x1b7   : > { %v1016_v43 = vadd.f32 %v1015_v42, %v950_v41  ;;  %1342 = vst [vmem:[%s2366_s22 + $0xd0] sm:$0xff] %v886_v40  ;;  %1144 = vmatmul.f32.gmra.mxu1 %v2238_v37 }
 0x1b9   : > { %1343 = vst [vmem:[%s2366_s22 + $0xd8] sm:$0xff] %v1016_v43 }
 0x1ba   : > { %1212 = vmatmul.f32.gmra.mxu2 %v2245_v46 }
 0x1bb   : > { %1277 = vmatmul.f32.gmra.mxu3 %v2248_v47  ;;  %v823_v28 = vpop.f32.mrf.mxu0 }
 0x1bc   : > { %v888_v29 = vpop.f32.mrf.mxu1 }
 0x1bd   : > { %v889_v10 = vadd.f32 %v888_v29, %v823_v28  ;;  %v953_v48 = vpop.f32.mrf.mxu2 }
 0x1be   : > { %v1018_v11 = vpop.f32.mrf.mxu3  ;;  %1082 = vmatmul.f32.gmra.mxu0 %v2245_v46 }
 0x1bf   : > { %v1019_v44 = vadd.f32 %v1018_v11, %v953_v48  ;;  %1344 = vst [vmem:[%s2366_s22 + $0xe0] sm:$0xff] %v889_v10  ;;  %1147 = vmatmul.f32.gmra.mxu1 %v2248_v47 }
 0x1c1   : > { %1345 = vst [vmem:[%s2366_s22 + $0xe8] sm:$0xff] %v1019_v44 }
 0x1c2   : > { %1215 = vmatmul.f32.gmra.mxu2 %v2255_v54 }
 0x1c3   : > { %1280 = vmatmul.f32.gmra.mxu3 %v2258_v55  ;;  %v826_v36 = vpop.f32.mrf.mxu0 }
 0x1c4   : > { %v891_v37 = vpop.f32.mrf.mxu1 }
 0x1c5   : > { %v892_v45 = vadd.f32 %v891_v37, %v826_v36  ;;  %v956_v49 = vpop.f32.mrf.mxu2 }
 0x1c6   : > { %v1021_v52 = vpop.f32.mrf.mxu3  ;;  %1085 = vmatmul.f32.gmra.mxu0 %v2255_v54 }
 0x1c7   : > { %v1022_v46 = vadd.f32 %v1021_v52, %v956_v49  ;;  %1346 = vst [vmem:[%s2366_s22 + $0xf0] sm:$0xff] %v892_v45  ;;  %1150 = vmatmul.f32.gmra.mxu1 %v2258_v55 }
 0x1c9   : > { %1347 = vst [vmem:[%s2366_s22 + $0xf8] sm:$0xff] %v1022_v46 }
 0x1ca   : > { %1837 = shalt.err (!%p1834_p0)
}
 0x1cb   : > { %s1963_s22 = smov 256   ;;  %s1964_s28 = smov 16   ;;  %v1041_v47 = vpop.f32.mrf.mxu0 }
 0x1cc   : > { %1651 = dma.vmem_to_hbm [thread:$0]  (%p2067_p5), %s1427_s26, 4096, %s1429_s18, %s2462_s27, %s1963_s22, %s1963_s22, %s1964_s28   ;;  %v1106_v54 = vpop.f32.mrf.mxu1 }
 0x1cd   : > { %v1107_v55 = vadd.f32 %v1106_v54, %v1041_v47  ;;  %v1171_v53 = vpop.f32.mrf.mxu2  ;;  %s1405_s12 = scalar_lea.hbm %s2581_s2, %s2450_s23  ;;  %s1406_s29 = sshll.u32 %s2267_s1, 4  ;;  %s1407_s29 = int_to_ptr.vmem [resolvable:$true] %s1406_s29 }
 0x1ce   : > { %v1236_v58 = vpop.f32.mrf.mxu3  ;;  %s1408_s30 = sshll.u32 %s1405_s12, 4  ;;  %s2484_s21 = scalar_lea.vmem [#allocation10], %s2090_s11  ;;  %s1409_s30 = int_to_ptr.hbm [resolvable:$true] %s1408_s30 }
 0x1cf   : > { %v1237_v59 = vadd.f32 %v1236_v58, %v1171_v53  ;;  %1348 = vst [vmem:[%s2484_s21] sm:$0xff] %v1107_v55  ;;  %s1381_s26 = scalar_lea.sflag [#allocation4], %s2087_s8  ;;  %s1852_s18 = sshra.s32 %s1409_s30, 4  ;;  %s1853_s18 = int_to_ptr.hbm [resolvable:$true] %s1852_s18 }
 0x1d0   : > { %s1854_s5 = scalar_lea.hbm %s1853_s18, 256  ;;  %s1858_s13 = scalar_lea.hbm %s2581_s2, 512 }
 0x1d1   : > { %1349 = vst [vmem:[%s2484_s21 + $0x8] sm:$0xff] %v1237_v59  ;;  %p1855_p3 = scmp.ne.s32.totalorder %s1853_s18, %s1854_s5  ;;  %p1859_p2 = scmp.lt.s32.totalorder %s1853_s18, %s2581_s2 }
 0x1d2   : > { %p1860_p1 = scmp.lt.s32.totalorder %s1858_s13, %s1854_s5 }
 0x1d3   : > { %p1856_p7 = pnand %p1855_p3, %p2067_p5 }
 0x1d4   : > { %p1861_p4 = por %p1860_p1, %p1859_p2 }
 0x1d5   : > { %p1857_p9 = pneg %p1856_p7 }
 0x1d7   : > { %p1862_p8 = pnand %p1861_p4, %p1857_p9 }
 0x1d9   : > { %1865 = shalt.err (!%p1862_p8)
}
 0x1da   : > { %1650 = dma.vmem_to_hbm [thread:$0]  (%p2067_p5), %s1407_s29, 4096, %s1409_s30, %s1381_s26, %s1963_s22, %s1963_s22, %s1964_s28   ;;  %v1044_v62 = vpop.f32.mrf.mxu0  ;;  %v1109_v50 = vpop.f32.mrf.mxu1 }
 0x1db   : > { %v1110_v51 = vadd.f32 %v1109_v50, %v1044_v62  ;;  %v1174_v63 = vpop.f32.mrf.mxu2  ;;  %v1239_v24 = vpop.f32.mrf.mxu3  ;;  %s1445_s9 = scalar_lea.hbm %s2583_s4, %s2450_s23  ;;  %s1446_s29 = sshll.u32 %s2484_s21, 4  ;;  %s1447_s29 = int_to_ptr.vmem [resolvable:$true] %s1446_s29 }
 0x1dc   : > { %v1240_v2 = vadd.f32 %v1239_v24, %v1174_v63  ;;  %s2534_s12 = sshll.u32 %s1445_s9, 4  ;;  %s1886_s5 = scalar_lea.hbm %s2583_s4, 512  ;;  %s1449_s12 = int_to_ptr.hbm [resolvable:$true] %s2534_s12 }
 0x1dd   : > { %1350 = vst [vmem:[%s2484_s21 + $0x10] sm:$0xff] %v1110_v51  ;;  %s1880_s30 = sshra.s32 %s1449_s12, 4  ;;  %s1881_s30 = int_to_ptr.hbm [resolvable:$true] %s1880_s30 }
 0x1de   : > { %1351 = vst [vmem:[%s2484_s21 + $0x18] sm:$0xff] %v1240_v2  ;;  %s1882_s26 = scalar_lea.hbm %s1881_s30, 256  ;;  %p1887_p0 = scmp.lt.s32.totalorder %s1881_s30, %s2583_s4 }
 0x1df   : > { %p1883_p10 = scmp.ne.s32.totalorder %s1881_s30, %s1882_s26  ;;  %p1888_p3 = scmp.lt.s32.totalorder %s1886_s5, %s1882_s26 }
 0x1e1   : > { %p1884_p12 = pnand %p1883_p10, %p2067_p5  ;;  %p1889_p7 = por %p1888_p3, %p1887_p0 }
 0x1e2   : > { %v1047_v25 = vpop.f32.mrf.mxu0  ;;  %v1112_v3 = vpop.f32.mrf.mxu1 }
 0x1e3   : > { %v1113_v4 = vadd.f32 %v1112_v3, %v1047_v25  ;;  %v1177_v56 = vpop.f32.mrf.mxu2  ;;  %v1242_v57 = vpop.f32.mrf.mxu3  ;;  %p1885_p13 = pneg %p1884_p12 }
 0x1e4   : > { %v1243_v5 = vadd.f32 %v1242_v57, %v1177_v56 }
 0x1e5   : > { %1352 = vst [vmem:[%s2484_s21 + $0x20] sm:$0xff] %v1113_v4  ;;  %p1890_p9 = pnand %p1889_p7, %p1885_p13 }
 0x1e6   : > { %1353 = vst [vmem:[%s2484_s21 + $0x28] sm:$0xff] %v1243_v5 }
 0x1ea   : > { %v1050_v8 = vpop.f32.mrf.mxu0  ;;  %v1115_v9 = vpop.f32.mrf.mxu1 }
 0x1eb   : > { %v1116_v12 = vadd.f32 %v1115_v9, %v1050_v8  ;;  %v1180_v13 = vpop.f32.mrf.mxu2  ;;  %v1245_v0 = vpop.f32.mrf.mxu3 }
 0x1ec   : > { %v1246_v32 = vadd.f32 %v1245_v0, %v1180_v13 }
 0x1ed   : > { %1354 = vst [vmem:[%s2484_s21 + $0x30] sm:$0xff] %v1116_v12 }
 0x1ee   : > { %1355 = vst [vmem:[%s2484_s21 + $0x38] sm:$0xff] %v1246_v32 }
 0x1f2   : > { %v1053_v16 = vpop.f32.mrf.mxu0  ;;  %v1118_v33 = vpop.f32.mrf.mxu1 }
 0x1f3   : > { %v1119_v17 = vadd.f32 %v1118_v33, %v1053_v16  ;;  %v1183_v18 = vpop.f32.mrf.mxu2  ;;  %v1248_v1 = vpop.f32.mrf.mxu3 }
 0x1f4   : > { %v1249_v19 = vadd.f32 %v1248_v1, %v1183_v18 }
 0x1f5   : > { %1356 = vst [vmem:[%s2484_s21 + $0x40] sm:$0xff] %v1119_v17 }
 0x1f6   : > { %1357 = vst [vmem:[%s2484_s21 + $0x48] sm:$0xff] %v1249_v19 }
 0x1fa   : > { %v1056_v22 = vpop.f32.mrf.mxu0  ;;  %v1121_v23 = vpop.f32.mrf.mxu1 }
 0x1fb   : > { %v1122_v26 = vadd.f32 %v1121_v23, %v1056_v22  ;;  %v1186_v27 = vpop.f32.mrf.mxu2  ;;  %v1251_v6 = vpop.f32.mrf.mxu3 }
 0x1fc   : > { %v1252_v7 = vadd.f32 %v1251_v6, %v1186_v27 }
 0x1fd   : > { %1358 = vst [vmem:[%s2484_s21 + $0x50] sm:$0xff] %v1122_v26 }
 0x1fe   : > { %1359 = vst [vmem:[%s2484_s21 + $0x58] sm:$0xff] %v1252_v7 }
 0x202   : > { %v1059_v38 = vpop.f32.mrf.mxu0  ;;  %v1124_v60 = vpop.f32.mrf.mxu1 }
 0x203   : > { %v1125_v30 = vadd.f32 %v1124_v60, %v1059_v38  ;;  %v1189_v61 = vpop.f32.mrf.mxu2  ;;  %v1254_v14 = vpop.f32.mrf.mxu3 }
 0x204   : > { %v1255_v15 = vadd.f32 %v1254_v14, %v1189_v61 }
 0x205   : > { %1360 = vst [vmem:[%s2484_s21 + $0x60] sm:$0xff] %v1125_v30 }
 0x206   : > { %1361 = vst [vmem:[%s2484_s21 + $0x68] sm:$0xff] %v1255_v15 }
 0x20a   : > { %v1062_v31 = vpop.f32.mrf.mxu0  ;;  %v1127_v34 = vpop.f32.mrf.mxu1 }
 0x20b   : > { %v1128_v35 = vadd.f32 %v1127_v34, %v1062_v31  ;;  %v1192_v39 = vpop.f32.mrf.mxu2  ;;  %v1257_v20 = vpop.f32.mrf.mxu3 }
 0x20c   : > { %v1258_v21 = vadd.f32 %v1257_v20, %v1192_v39 }
 0x20d   : > { %1362 = vst [vmem:[%s2484_s21 + $0x70] sm:$0xff] %v1128_v35 }
 0x20e   : > { %1363 = vst [vmem:[%s2484_s21 + $0x78] sm:$0xff] %v1258_v21 }
 0x212   : > { %v1065_v40 = vpop.f32.mrf.mxu0  ;;  %v1130_v41 = vpop.f32.mrf.mxu1 }
 0x213   : > { %v1131_v42 = vadd.f32 %v1130_v41, %v1065_v40  ;;  %v1195_v43 = vpop.f32.mrf.mxu2  ;;  %v1260_v28 = vpop.f32.mrf.mxu3 }
 0x214   : > { %v1261_v29 = vadd.f32 %v1260_v28, %v1195_v43 }
 0x215   : > { %1364 = vst [vmem:[%s2484_s21 + $0x80] sm:$0xff] %v1131_v42 }
 0x216   : > { %1365 = vst [vmem:[%s2484_s21 + $0x88] sm:$0xff] %v1261_v29 }
 0x21a   : > { %v1068_v10 = vpop.f32.mrf.mxu0  ;;  %v1133_v48 = vpop.f32.mrf.mxu1 }
 0x21b   : > { %v1134_v11 = vadd.f32 %v1133_v48, %v1068_v10  ;;  %v1198_v44 = vpop.f32.mrf.mxu2  ;;  %v1263_v36 = vpop.f32.mrf.mxu3 }
 0x21c   : > { %v1264_v37 = vadd.f32 %v1263_v36, %v1198_v44 }
 0x21d   : > { %1366 = vst [vmem:[%s2484_s21 + $0x90] sm:$0xff] %v1134_v11 }
 0x21e   : > { %1367 = vst [vmem:[%s2484_s21 + $0x98] sm:$0xff] %v1264_v37 }
 0x222   : > { %v1071_v45 = vpop.f32.mrf.mxu0  ;;  %v1136_v49 = vpop.f32.mrf.mxu1 }
 0x223   : > { %v1137_v52 = vadd.f32 %v1136_v49, %v1071_v45  ;;  %v1201_v46 = vpop.f32.mrf.mxu2  ;;  %v1266_v47 = vpop.f32.mrf.mxu3 }
 0x224   : > { %v1267_v54 = vadd.f32 %v1266_v47, %v1201_v46 }
 0x225   : > { %1368 = vst [vmem:[%s2484_s21 + $0xa0] sm:$0xff] %v1137_v52 }
 0x226   : > { %1369 = vst [vmem:[%s2484_s21 + $0xa8] sm:$0xff] %v1267_v54 }
 0x22a   : > { %v1074_v55 = vpop.f32.mrf.mxu0  ;;  %v1139_v53 = vpop.f32.mrf.mxu1 }
 0x22b   : > { %v1140_v58 = vadd.f32 %v1139_v53, %v1074_v55  ;;  %v1204_v59 = vpop.f32.mrf.mxu2  ;;  %v1269_v62 = vpop.f32.mrf.mxu3 }
 0x22c   : > { %v1270_v50 = vadd.f32 %v1269_v62, %v1204_v59 }
 0x22d   : > { %1370 = vst [vmem:[%s2484_s21 + $0xb0] sm:$0xff] %v1140_v58 }
 0x22e   : > { %1371 = vst [vmem:[%s2484_s21 + $0xb8] sm:$0xff] %v1270_v50 }
 0x232   : > { %v1077_v51 = vpop.f32.mrf.mxu0  ;;  %v1142_v63 = vpop.f32.mrf.mxu1 }
 0x233   : > { %v1143_v24 = vadd.f32 %v1142_v63, %v1077_v51  ;;  %v1207_v2 = vpop.f32.mrf.mxu2  ;;  %v1272_v25 = vpop.f32.mrf.mxu3 }
 0x234   : > { %v1273_v3 = vadd.f32 %v1272_v25, %v1207_v2 }
 0x235   : > { %1372 = vst [vmem:[%s2484_s21 + $0xc0] sm:$0xff] %v1143_v24 }
 0x236   : > { %1373 = vst [vmem:[%s2484_s21 + $0xc8] sm:$0xff] %v1273_v3 }
 0x23a   : > { %v1080_v4 = vpop.f32.mrf.mxu0  ;;  %v1145_v56 = vpop.f32.mrf.mxu1 }
 0x23b   : > { %v1146_v57 = vadd.f32 %v1145_v56, %v1080_v4  ;;  %v1210_v5 = vpop.f32.mrf.mxu2  ;;  %v1275_v8 = vpop.f32.mrf.mxu3 }
 0x23c   : > { %v1276_v9 = vadd.f32 %v1275_v8, %v1210_v5 }
 0x23d   : > { %1374 = vst [vmem:[%s2484_s21 + $0xd0] sm:$0xff] %v1146_v57 }
 0x23e   : > { %1375 = vst [vmem:[%s2484_s21 + $0xd8] sm:$0xff] %v1276_v9 }
 0x242   : > { %v1083_v12 = vpop.f32.mrf.mxu0  ;;  %v1148_v13 = vpop.f32.mrf.mxu1 }
 0x243   : > { %v1149_v0 = vadd.f32 %v1148_v13, %v1083_v12  ;;  %v1213_v32 = vpop.f32.mrf.mxu2  ;;  %v1278_v16 = vpop.f32.mrf.mxu3 }
 0x244   : > { %v1279_v33 = vadd.f32 %v1278_v16, %v1213_v32 }
 0x245   : > { %1376 = vst [vmem:[%s2484_s21 + $0xe0] sm:$0xff] %v1149_v0 }
 0x246   : > { %1377 = vst [vmem:[%s2484_s21 + $0xe8] sm:$0xff] %v1279_v33 }
 0x24a   : > { %v1086_v17 = vpop.f32.mrf.mxu0  ;;  %v1151_v18 = vpop.f32.mrf.mxu1 }
 0x24b   : > { %v1152_v1 = vadd.f32 %v1151_v18, %v1086_v17  ;;  %v1216_v19 = vpop.f32.mrf.mxu2  ;;  %v1281_v22 = vpop.f32.mrf.mxu3 }
 0x24c   : > { %v1282_v23 = vadd.f32 %v1281_v22, %v1216_v19 }
 0x24d   : > { %1378 = vst [vmem:[%s2484_s21 + $0xf0] sm:$0xff] %v1152_v1 }
 0x24e   : > { %1379 = vst [vmem:[%s2484_s21 + $0xf8] sm:$0xff] %v1282_v23 }
 0x24f   : > { %1893 = shalt.err (!%p1890_p9)
}
 0x250   : > { %1652 = dma.vmem_to_hbm [thread:$0]  (%p2067_p5), %s1447_s29, 4096, %s1449_s12, %s2462_s27, %s1963_s22, %s1963_s22, %s1964_s28  }
 0x251 PF: > { %s1463_s21 = sand.u32 1, %s1936_s15   ;;  %p1665_p2 = pnand %p1619_p11, %p2037_p6 }
 0x252   : > { %s1464_s13 = scalar_lea.sflag [#allocation4], %s1463_s21 }
 0x253   : > { %p1666_p1 = pneg %p1665_p2 }
 0x255   : > { %1927 = dma.done.wait (%p1666_p1), %s1464_s13, 4096  }
 0x256   : > { %1929 = vsyncadd (%p1666_p1), %s1464_s13, 4294963200  ;;  %s2594_s25 = sadd.s32 4294967294, %s1956_s20  }
 0x257   : > { %s1473_s10 = sand.u32 1, %s2594_s25  }
 0x258   : > { %s1474_s11 = scalar_lea.sflag [#allocation9], %s1473_s10 }
 0x259   : > { %1931 = dma.done.wait (%p1666_p1), %s1474_s11, 8192  }
 0x25a   : > { %1933 = vsyncadd (%p1666_p1), %s1474_s11, 4294959104  ;;  %s25_s20 = sadd.s32 1, %s1956_s20   ;;  %s2595_s24 = sld [smem:[#allocation15_spill]] }
 0x25b   : > { %p22_p5 = scmp.ge.s32.totalorder %s25_s20, 4   ;;  %s2596_s15 = smov %s1940_s16 }
 0x25c   : > { %s2597_s16 = smov %s1944_s17  ;;  %s2598_s17 = smov %s2076_s14 }
 0x25d   : > { %s2599_s18 = smov %s1952_s19  ;;  %24 = sbr.rel (!%p22_p5) target bundleno = 11 (0xb), region = 109 }
 0x260   : > { %s2600_s19 = smov %s2595_s24 }
 0x262   :  { %1490 = vsyncpa [#allocation3], 1 }
 0x263   :  { %1492 = vsyncpa [#allocation3 + $0x1], 1 }
 0x264   :  { %1493 = vsyncpa [#allocation6], 1 }
 0x265   :  { %1494 = vsyncpa [#allocation4], 1 }
 0x266   :  { %1496 = vsyncpa [#allocation4 + $0x1], 1 }
 0x267   :  { %1497 = vsyncpa [#allocation9], 1 }
 0x268   :  { %1499 = vsyncpa [#allocation9 + $0x1], 1 }

</bundles_post_ra>
